<compile_context>
chip_gen: v7x
topology: tpu7x:2x2x1
jax: 0.10.0
libtpu: 0.0.40
codegen_flags: <defaults>
</compile_context>

<pallas_src>
import functools
import math

import jax
import jax.numpy as jnp
from jax.experimental import pallas as pl
from jax.experimental.pallas import tpu as pltpu


_VMEM = pltpu.MemorySpace.VMEM
_VMEM_LIMIT_BYTES = 32 * 1024 * 1024   # explicit (v5e scoped default is only 16 MiB)


def _vmem_specs(n):
    return [pl.BlockSpec(memory_space=_VMEM) for _ in range(n)]


# ----------------------------------------------------------------------------
# Kernel 1: three LightGCN propagations, one launch, one domain per grid step
# ----------------------------------------------------------------------------
def _gcn_kernel(adj_ref, emb_ref, out_ref, *, n_layers):
    adj = adj_ref[0]                      # (Np, Np) bf16
    e = emb_ref[0]                        # (Np, D)  f32
    acc = e
    for _ in range(n_layers):
        e = jnp.dot(adj, e.astype(jnp.bfloat16), preferred_element_type=jnp.float32)
        acc = acc + e
    out_ref[0] = acc * (1.0 / float(n_layers + 1))


def lightgcn_propagate3(adjs, embs, n_layers):
    """Three LightGCN propagations in one pallas_call, grid=(3,)."""
    # TODO(synk): at production CoPD scale the dense adjacency will not fit VMEM
    # (64 MiB on v7x); gate on pltpu.get_tpu_info().vmem_capacity_bytes and
    # switch to a tiled (i,k)-grid matmul with an f32 VMEM accumulator, or a
    # sparse neighbour-list formulation via PrefetchScalarGridSpec.
    sizes = [a.shape[0] for a in adjs]
    np_ = max(sizes)
    np_ = ((np_ + 7) // 8) * 8            # sublane-align the padded node count
    d = embs[0].shape[1]
    adj_stack = jnp.stack([
        jnp.pad(a, ((0, np_ - a.shape[0]), (0, np_ - a.shape[1]))).astype(jnp.bfloat16)
        for a in adjs])
    emb_stack = jnp.stack([
        jnp.pad(e, ((0, np_ - e.shape[0]), (0, 0))).astype(jnp.float32)
        for e in embs])
    out = pl.pallas_call(
        functools.partial(_gcn_kernel, n_layers=n_layers),
        grid=(3,),
        out_shape=jax.ShapeDtypeStruct((3, np_, d), jnp.float32),
        in_specs=[pl.BlockSpec((1, np_, np_), lambda i: (i, 0, 0)),
                  pl.BlockSpec((1, np_, d), lambda i: (i, 0, 0))],
        out_specs=pl.BlockSpec((1, np_, d), lambda i: (i, 0, 0)),
        compiler_params=pltpu.CompilerParams(
            dimension_semantics=("parallel",),
            vmem_limit_bytes=_VMEM_LIMIT_BYTES),
    )(adj_stack, emb_stack)
    return [out[i, :sizes[i]] for i in range(3)]


# ----------------------------------------------------------------------------
# Packed-parameter layouts for the batch-core kernel
# ----------------------------------------------------------------------------
def _weight_layout(D):
    entries = (('popint_w1', D, 2 * D),     # first layer of pop|int encoders
               ('pop_w2', 2 * D, D),        # zero-padded: acts on h[:, :D]
               ('int_w2', 2 * D, D),        # zero-padded: acts on h[:, D:]
               ('dom_w', D, 2),
               ('att1_s_w', 3 * D, D),
               ('att2_s_w', D, 3),
               ('att1_t_w', 3 * D, D),
               ('att2_t_w', D, 3),
               ('agg_s_w', 2 * D, D),
               ('agg_t_w', 2 * D, D))
    layout, off = {}, 0
    for name, r, c in entries:
        layout[name] = (off, r, c)
        off += r
    return layout, off


def _bias_layout(D):
    entries = (('popint_b1', 2 * D), ('pop_b2', D), ('int_b2', D), ('dom_b', 2),
               ('att1_s_b', D), ('att2_s_b', 3), ('att1_t_b', D), ('att2_t_b', 3),
               ('agg_s_b', D), ('agg_t_b', D))
    layout = {}
    for j, (name, c) in enumerate(entries):
        layout[name] = (j * 128, c)          # 128-aligned lane offsets
    return layout, len(entries) * 128


def pack_core_weights(params, D):
    """Pack all kernel-2 weights/biases into two slabs (two DMAs instead of ~20)."""
    wl, w_rows = _weight_layout(D)
    bl, b_cols = _bias_layout(D)
    zdd = jnp.zeros((D, D), jnp.float32)
    mats = {
        'popint_w1': jnp.concatenate([params['pop_w1'], params['int_w1']], axis=1),
        'pop_w2': jnp.concatenate([params['pop_w2'], zdd], axis=0),
        'int_w2': jnp.concatenate([zdd, params['int_w2']], axis=0),
        'dom_w': params['dom_w'],
        'att1_s_w': params['att1_s_w'], 'att2_s_w': params['att2_s_w'],
        'att1_t_w': params['att1_t_w'], 'att2_t_w': params['att2_t_w'],
        'agg_s_w': params['agg_s_w'], 'agg_t_w': params['agg_t_w'],
    }
    w_slab = jnp.zeros((w_rows, 128), jnp.float32)
    for name, (off, r, c) in wl.items():
        w_slab = w_slab.at[off:off + r, :c].set(mats[name])
    vecs = {
        'popint_b1': jnp.concatenate([params['pop_b1'], params['int_b1']], axis=1),
        'pop_b2': params['pop_b2'], 'int_b2': params['int_b2'],
        'dom_b': params['dom_b'],
        'att1_s_b': params['att1_s_b'], 'att2_s_b': params['att2_s_b'],
        'att1_t_b': params['att1_t_b'], 'att2_t_b': params['att2_t_b'],
        'agg_s_b': params['agg_s_b'], 'agg_t_b': params['agg_t_b'],
    }
    b_slab = jnp.zeros((8, b_cols), jnp.float32)
    for name, (off, c) in bl.items():
        b_slab = b_slab.at[0:1, off:off + c].set(vecs[name])
    return w_slab, b_slab


# ----------------------------------------------------------------------------
# Kernel 2: fused batch core.
# Output column layout (B, 22):
#   0 pos_s_int  1 pos_t_int  2 pos_s_pop  3 pos_t_pop
#   4 lse_pop_s  5 lse_pop_t  6 lse_int_s  7 lse_int_t     (log-sum-exp denoms)
#   8 pos_s_score 9 neg_s_score 10 pos_t_score 11 neg_t_score
#   12..15 cosine(s_pos|s_neg|t_pos|t_neg vs pos_share)
#   16:18 dom sigmoid (source-spe)  18:20 (target-spe)  20:22 (share)
# ----------------------------------------------------------------------------
def _batch_core_kernel(batch_ref, its_t_ref, itt_t_ref, w_ref, b_ref, out_ref,
                       *, B, D, temp, wl, bl):
    def mm(a, b):
        return jnp.dot(a, b, preferred_element_type=jnp.float32)

    def W(name):
        off, r, c = wl[name]
        return w_ref[off:off + r, 0:c]

    def Wrows(name, r0, r1):
        off, _, c = wl[name]
        return w_ref[off + r0:off + r1, 0:c]

    def Bv(name):
        off, c = bl[name]
        return b_ref[0:1, off:off + c]

    xb = batch_ref[...]                                    # (11B, D)
    # slab order: s_us, t_us, ush, sps, sns, tps, tns, sph, snh, tph, tnh
    s_us, t_us, ush = xb[0:B], xb[B:2 * B], xb[2 * B:3 * B]
    sps, sns = xb[3 * B:4 * B], xb[4 * B:5 * B]
    tps, tns = xb[5 * B:6 * B], xb[6 * B:7 * B]
    sph, snh = xb[7 * B:8 * B], xb[8 * B:9 * B]
    tph, tnh = xb[9 * B:10 * B], xb[10 * B:11 * B]

    # --- pop / int encoders: shared first-layer matmul; padded second-layer
    # weights so h is never lane-sliced ---
    h = jnp.maximum(mm(ush, W('popint_w1')) + Bv('popint_b1'), 0.0)   # (B, 2D)
    pop_user = mm(h, W('pop_w2')) + Bv('pop_b2')                      # (B, D)
    int_user = mm(h, W('int_w2')) + Bv('int_b2')                      # (B, D)

    # --- domain classifier: users already contiguous in the slab ---
    dom_logits = mm(xb[0:3 * B], W('dom_w')) + Bv('dom_b')            # (3B, 2)
    dom_scores = jax.nn.sigmoid(dom_logits)

    # --- attention fusion: split-K dots, no (B, 3D) lane concat ---
    def fuse(spe, w1, b1, w2, b2):
        hh = jnp.maximum(
            mm(spe, Wrows(w1, 0, D))
            + mm(int_user, Wrows(w1, D, 2 * D))
            + mm(pop_user, Wrows(w1, 2 * D, 3 * D)) + Bv(b1), 0.0)
        lg = mm(hh, W(w2)) + Bv(b2)                                   # (B, 3)
        m = jnp.max(lg, axis=1, keepdims=True)
        e = jnp.exp(lg - m)
        att = e / jnp.sum(e, axis=1, keepdims=True)
        return spe * att[:, 0:1] + int_user * att[:, 1:2] + pop_user * att[:, 2:3]

    s_user_fused = fuse(s_us, 'att1_s_w', 'att1_s_b', 'att2_s_w', 'att2_s_b')
    t_user_fused = fuse(t_us, 'att1_t_w', 'att1_t_b', 'att2_t_w', 'att2_t_b')

    # --- agg linears: pos+neg batched (contiguous slab rows), split-K dots ---
    item_s = (mm(xb[3 * B:5 * B], Wrows('agg_s_w', 0, D))
              + mm(xb[7 * B:9 * B], Wrows('agg_s_w', D, 2 * D)) + Bv('agg_s_b'))
    item_t = (mm(xb[5 * B:7 * B], Wrows('agg_t_w', 0, D))
              + mm(xb[9 * B:11 * B], Wrows('agg_t_w', D, 2 * D)) + Bv('agg_t_b'))
    s_pos_fused, s_neg_fused = item_s[:B], item_s[B:]
    t_pos_fused, t_neg_fused = item_t[:B], item_t[B:]

    # --- contrastive denominators: pre-transposed tables, stable log-sum-exp ---
    # TODO(synk): at real item counts stream the item axis over a grid step and
    # accumulate the exp-sum online (EUP exp count 2B*N is the binding unit).
    pi = jnp.concatenate([pop_user, int_user], axis=0)                # (2B, D)
    inv_t = 1.0 / temp
    ss = mm(pi, its_t_ref[...]) * inv_t                               # (2B, Ns)
    st = mm(pi, itt_t_ref[...]) * inv_t                               # (2B, Nt)
    ms = jnp.max(ss, axis=1, keepdims=True)
    lse_s = ms + jnp.log(jnp.sum(jnp.exp(ss - ms), axis=1, keepdims=True))
    mt = jnp.max(st, axis=1, keepdims=True)
    lse_t = mt + jnp.log(jnp.sum(jnp.exp(st - mt), axis=1, keepdims=True))

    # --- 18 row-wise reductions as ONE MXU matmul against a ones column ---
    prods = jnp.concatenate([
        int_user * sph, int_user * tph, pop_user * sph, pop_user * tph,
        s_user_fused * s_pos_fused, s_user_fused * s_neg_fused,
        t_user_fused * t_pos_fused, t_user_fused * t_neg_fused,
        sps * sph, sns * sph, tps * tph, tns * tph,
        sps * sps, sns * sns, sph * sph, tps * tps, tns * tns, tph * tph,
    ], axis=0)                                                        # (18B, D)
    rd = mm(prods, jnp.ones((D, 1), jnp.float32))                     # (18B, 1)

    def r(i):
        return rd[i * B:(i + 1) * B]

    eps = 1e-8   # torch cosine_similarity clamps each norm separately
    n_sps = jnp.maximum(jnp.sqrt(r(12)), eps)
    n_sns = jnp.maximum(jnp.sqrt(r(13)), eps)
    n_sph = jnp.maximum(jnp.sqrt(r(14)), eps)
    n_tps = jnp.maximum(jnp.sqrt(r(15)), eps)
    n_tns = jnp.maximum(jnp.sqrt(r(16)), eps)
    n_tph = jnp.maximum(jnp.sqrt(r(17)), eps)

    # --- direct column-slice stores (no 19-way lane concat) ---
    out_ref[:, 0:1] = r(0)
    out_ref[:, 1:2] = r(1)
    out_ref[:, 2:3] = r(2)
    out_ref[:, 3:4] = r(3)
    out_ref[:, 4:5] = lse_s[:B]
    out_ref[:, 5:6] = lse_t[:B]
    out_ref[:, 6:7] = lse_s[B:]
    out_ref[:, 7:8] = lse_t[B:]
    out_ref[:, 8:9] = r(4)
    out_ref[:, 9:10] = r(5)
    out_ref[:, 10:11] = r(6)
    out_ref[:, 11:12] = r(7)
    out_ref[:, 12:13] = r(8) / (n_sps * n_sph)
    out_ref[:, 13:14] = r(9) / (n_sns * n_sph)
    out_ref[:, 14:15] = r(10) / (n_tps * n_tph)
    out_ref[:, 15:16] = r(11) / (n_tns * n_tph)
    out_ref[:, 16:18] = dom_scores[0:B]
    out_ref[:, 18:20] = dom_scores[B:2 * B]
    out_ref[:, 20:22] = dom_scores[2 * B:3 * B]


def batch_core(batch_slab, its_t, itt_t, w_slab, b_slab, *, B, D, temp, wl, bl):
    # TODO(synk): for a v7x batch-level split across the two TensorCores, add a
    # grid=(2,) batch-halving axis marked "parallel"; not worth it at B=8.
    kernel = functools.partial(_batch_core_kernel, B=B, D=D, temp=temp, wl=wl, bl=bl)
    return pl.pallas_call(
        kernel,
        out_shape=jax.ShapeDtypeStruct((B, 22), jnp.float32),
        in_specs=_vmem_specs(5),
        out_specs=pl.BlockSpec(memory_space=_VMEM),
        compiler_params=pltpu.CompilerParams(vmem_limit_bytes=_VMEM_LIMIT_BYTES),
    )(batch_slab, its_t, itt_t, w_slab, b_slab)


# ----------------------------------------------------------------------------
# Plain-JAX glue: losses (same semantics as the torch reductions)
# ----------------------------------------------------------------------------
def cross_entropy(scores, labels):
    # TODO(synk): reference applies CE/log_softmax on sigmoid outputs (double
    # squashing) — kept faithful.
    ls = jax.nn.log_softmax(scores, axis=1)
    picked = jnp.take_along_axis(ls, labels[:, None], axis=1)[:, 0]
    return -jnp.mean(picked)


def kld_batchmean(log_probs, target):
    return jnp.sum(target * (jnp.log(target) - log_probs)) / log_probs.shape[0]


# ----------------------------------------------------------------------------
# Deterministic parameter / adjacency construction
# ----------------------------------------------------------------------------
def xavier_uniform(key, shape):
    bound = math.sqrt(6.0 / (shape[0] + shape[1]))
    return jax.random.uniform(key, shape, jnp.float32, -bound, bound)


def linear_params(key, fan_in, fan_out):
    kw, kb = jax.random.split(key)
    w = xavier_uniform(kw, (fan_in, fan_out))            # stored (in, out): y = x @ w + b
    bb = 1.0 / math.sqrt(fan_in)
    b = jax.random.uniform(kb, (1, fan_out), jnp.float32, -bb, bb)
    return w, b


def make_norm_adj(key, n_users, n_items):
    n = n_users + n_items
    r = (jax.random.uniform(key, (n_users, n_items)) < 0.3).astype(jnp.float32)
    a = jnp.zeros((n, n), jnp.float32)
    a = a.at[:n_users, n_users:].set(r)
    a = a.at[n_users:, :n_users].set(r.T)
    deg = jnp.maximum(a.sum(axis=1), 1.0)
    dinv = 1.0 / jnp.sqrt(deg)
    return a * dinv[:, None] * dinv[None, :]


def init_params(key, opt):
    D = opt['feature_dim']
    ks = jax.random.split(key, 16)
    p = {}
    p['source_user_emb'] = xavier_uniform(ks[0], (opt['source_user_num'], D))
    p['target_user_emb'] = xavier_uniform(ks[1], (opt['target_user_num'], D))
    p['source_item_emb'] = xavier_uniform(ks[2], (opt['source_item_num'], D))
    p['target_item_emb'] = xavier_uniform(ks[3], (opt['target_item_num'], D))
    p['share_user_emb'] = xavier_uniform(ks[4], (opt['source_user_num'], D))
    p['pop_w1'], p['pop_b1'] = linear_params(ks[5], D, D)
    p['pop_w2'], p['pop_b2'] = linear_params(ks[6], D, D)
    p['int_w1'], p['int_b1'] = linear_params(ks[7], D, D)
    p['int_w2'], p['int_b2'] = linear_params(ks[8], D, D)
    p['dom_w'], p['dom_b'] = linear_params(ks[9], D, 2)
    p['att1_s_w'], p['att1_s_b'] = linear_params(ks[10], 3 * D, D)
    p['att2_s_w'], p['att2_s_b'] = linear_params(ks[11], D, 3)
    p['att1_t_w'], p['att1_t_b'] = linear_params(ks[12], 3 * D, D)
    p['att2_t_w'], p['att2_t_b'] = linear_params(ks[13], D, 3)
    p['agg_s_w'], p['agg_s_b'] = linear_params(ks[14], 2 * D, D)
    p['agg_t_w'], p['agg_t_b'] = linear_params(ks[15], 2 * D, D)
    return p


# ----------------------------------------------------------------------------
# Forward pass (mirrors CoPD.forward)
# ----------------------------------------------------------------------------
def copd_forward(params, adjs, user, s_pos, s_neg, t_pos, t_neg, s_pop, t_pop, *, opt):
    D = opt['feature_dim']
    temp = opt['temp']
    U = opt['source_user_num']
    Ns = opt['source_item_num']
    Nt = opt['target_item_num']
    n_layers = opt['GNN']
    B = user.shape[0]

    # --- get_G_emb: three LightGCN propagations, one fused Pallas launch ---
    # TODO(synk): torch sparse adjacency + sparse_dropout represented dense;
    # dropout p=0.0 so sparse_dropout / nn.Dropout are the identity.
    all_s = jnp.concatenate([params['source_user_emb'], params['source_item_emb']], axis=0)
    all_t = jnp.concatenate([params['target_user_emb'], params['target_item_emb']], axis=0)
    all_x = jnp.concatenate([params['share_user_emb'], params['source_item_emb'],
                             params['target_item_emb']], axis=0)
    g_s, g_t, g_x = lightgcn_propagate3(
        [adjs['s'], adjs['t'], adjs['cross']], [all_s, all_t, all_x], n_layers)
    user_G_s, item_G_s = g_s[:U], g_s[U:]
    user_G_t, item_G_t = g_t[:U], g_t[U:]
    user_G_sha = g_x[:U]
    item_G_sha_s = g_x[U:U + Ns]
    item_G_sha_t = g_x[U + Ns:U + Ns + Nt]

    # --- batch gathers -> one (11B, D) slab (one DMA into kernel 2) ---
    batch_slab = jnp.concatenate([
        user_G_s[user], user_G_t[user], user_G_sha[user],
        item_G_s[s_pos], item_G_s[s_neg], item_G_t[t_pos], item_G_t[t_neg],
        item_G_sha_s[s_pos], item_G_sha_s[s_neg],
        item_G_sha_t[t_pos], item_G_sha_t[t_neg]], axis=0)

    w_slab, b_slab = pack_core_weights(params, D)
    wl, _ = _weight_layout(D)
    bl, _ = _bias_layout(D)

    sc = batch_core(batch_slab, item_G_sha_s.T, item_G_sha_t.T, w_slab, b_slab,
                    B=B, D=D, temp=temp, wl=wl, bl=bl)    # (B, 22) lane-packed

    pos_s_int, pos_t_int = sc[:, 0], sc[:, 1]
    pos_s_pop, pos_t_pop = sc[:, 2], sc[:, 3]
    lse_pop_s, lse_pop_t = sc[:, 4], sc[:, 5]
    lse_int_s, lse_int_t = sc[:, 6], sc[:, 7]
    pos_s_score, neg_s_score = sc[:, 8], sc[:, 9]
    pos_t_score, neg_t_score = sc[:, 10], sc[:, 11]
    cos_sp, cos_sn, cos_tp, cos_tn = sc[:, 12], sc[:, 13], sc[:, 14], sc[:, 15]
    s_spe_score = sc[:, 16:18]
    t_spe_score = sc[:, 18:20]
    share_score = sc[:, 20:22]

    # --- cosine-consistency losses (CosineEmbeddingLoss, margin 0) ---
    loss_cc = (jnp.mean(1.0 - cos_sp) + jnp.mean(jnp.maximum(cos_sn, 0.0))
               + jnp.mean(1.0 - cos_tp) + jnp.mean(jnp.maximum(cos_tn, 0.0)))

    # --- domain losses (CE / KLD on sigmoid scores, as in the reference) ---
    y_S = jnp.full((B, 2), 0.5, jnp.float32)
    loss_dom = (kld_batchmean(jax.nn.log_softmax(share_score, axis=1), y_S)
                + cross_entropy(s_spe_score, jnp.ones((B,), jnp.int32))
                + cross_entropy(t_spe_score, jnp.zeros((B,), jnp.int32)))

    # --- popularity / interest contrastive losses ---
    # log(w * exp(x/T)) expanded to log(w) + x/T (no second exp path); the
    # reference's (B,1)x(B,) broadcast (mean over B^2 cross terms) is kept.
    # log(sum(exp) + 1e-8) is recovered from the stable in-kernel lse via
    # logaddexp (mathematically identical, no overflow).
    log_eps = jnp.log(jnp.float32(1e-8))

    def pd_term(log_w, pos_score, lse):
        first = jnp.mean(log_w[:, None] + (pos_score / temp)[None, :])
        second = jnp.mean(jnp.logaddexp(lse, log_eps))
        return -first + second

    loss_pd = (pd_term(s_pop, pos_s_pop, lse_pop_s)
               + pd_term(t_pop, pos_t_pop, lse_pop_t)
               + pd_term(1.0 - s_pop, pos_s_int, lse_int_s)
               + pd_term(1.0 - t_pop, pos_t_int, lse_int_t))

    # --- BPR losses ---
    loss_bpr = (jnp.mean(jax.nn.softplus(neg_s_score - pos_s_score))
                + jnp.mean(jax.nn.softplus(neg_t_score - pos_t_score)))

    # --- L2 regularization on ego embeddings ---
    reg_loss = 0.5 * (jnp.sum(params['source_user_emb'][user] ** 2)
                      + jnp.sum(params['target_user_emb'][user] ** 2)
                      + jnp.sum(params['source_item_emb'][s_pos] ** 2)
                      + jnp.sum(params['target_item_emb'][t_pos] ** 2)
                      + jnp.sum(params['source_item_emb'][s_neg] ** 2)
                      + jnp.sum(params['target_item_emb'][t_neg] ** 2)
                      + jnp.sum(params['share_user_emb'][user] ** 2)) / float(B)

    loss_rec = loss_bpr + opt['reg_weight'] * reg_loss
    loss = loss_rec + loss_dom + opt['lambda1'] * loss_cc + opt['lambda2'] * loss_pd
    return loss


# ----------------------------------------------------------------------------
if __name__ == "__main__":
    opt = {
        'GNN': 2,
        'dropout': 0.0,           # eval / p=0 -> all dropouts are identity
        'feature_dim': 32,
        'temp': 0.2,
        'source_user_num': 16,
        'target_user_num': 16,
        'source_item_num': 24,
        'target_item_num': 20,
        'reg_weight': 1e-4,
        'lambda1': 0.5,
        'lambda2': 0.5,
    }
    B = 8

    root = jax.random.PRNGKey(0)
    (k_param, k_adj_s, k_adj_t, k_adj_x, k_u, k_sp, k_sn, k_tp, k_tn,
     k_pop_s, k_pop_t) = jax.random.split(root, 11)

    params = init_params(k_param, opt)
    adjs = {
        's': make_norm_adj(k_adj_s, opt['source_user_num'], opt['source_item_num']),
        't': make_norm_adj(k_adj_t, opt['source_user_num'], opt['target_item_num']),
        'cross': make_norm_adj(k_adj_x, opt['source_user_num'],
                               opt['source_item_num'] + opt['target_item_num']),
    }

    user = jax.random.randint(k_u, (B,), 0, opt['source_user_num'], jnp.int32)
    source_pos_item = jax.random.randint(k_sp, (B,), 0, opt['source_item_num'], jnp.int32)
    source_neg_item = jax.random.randint(k_sn, (B,), 0, opt['source_item_num'], jnp.int32)
    target_pos_item = jax.random.randint(k_tp, (B,), 0, opt['target_item_num'], jnp.int32)
    target_neg_item = jax.random.randint(k_tn, (B,), 0, opt['target_item_num'], jnp.int32)
    source_pop_item = jax.random.uniform(k_pop_s, (B,), jnp.float32)
    target_pop_item = jax.random.uniform(k_pop_t, (B,), jnp.float32)

    fwd = jax.jit(functools.partial(copd_forward, opt=opt))
    loss = fwd(params, adjs, user,
               source_pos_item, source_neg_item,
               target_pos_item, target_neg_item,
               source_pop_item, target_pop_item)
    loss = jax.block_until_ready(loss)
    assert loss.shape == () and bool(jnp.isfinite(loss)), f"bad loss: {loss}"
    print("KERNEL_OK")
</pallas_src>

<mosaic_0001>
module attributes {stable_mosaic.version = 11 : i64} {
  func.func @_gcn_kernel(%arg0: i32, %arg1: memref<1x64x64xbf16, #tpu.memory_space<vmem>>, %arg2: memref<1x64x32xf32, #tpu.memory_space<vmem>>, %arg3: memref<1x64x32xf32, #tpu.memory_space<vmem>>) attributes {dimension_semantics = [#tpu.dimension_semantics<parallel>], iteration_bounds = array<i64: 3>, scalar_prefetch = 0 : i64, scratch_operands = 0 : i64, tpu.core_type = #tpu.core_type<tc>, window_params = [{transform_indices = @transform_0, window_bounds = array<i64: 1, 64, 64>}, {transform_indices = @transform_1, window_bounds = array<i64: 1, 64, 32>}, {transform_indices = @transform_2, window_bounds = array<i64: 1, 64, 32>}]} {
    %c0 = arith.constant 0 : index
    %c0_0 = arith.constant 0 : index
    %c0_1 = arith.constant 0 : index
    %0 = vector.load %arg1[%c0, %c0_0, %c0_1] : memref<1x64x64xbf16, #tpu.memory_space<vmem>>, vector<1x64x64xbf16>
    %1 = vector.shape_cast %0 : vector<1x64x64xbf16> to vector<64x64xbf16>
    %c0_2 = arith.constant 0 : index
    %c0_3 = arith.constant 0 : index
    %c0_4 = arith.constant 0 : index
    %2 = vector.load %arg2[%c0_2, %c0_3, %c0_4] : memref<1x64x32xf32, #tpu.memory_space<vmem>>, vector<1x64x32xf32>
    %3 = vector.shape_cast %2 : vector<1x64x32xf32> to vector<64x32xf32>
    %4 = arith.truncf %3 : vector<64x32xf32> to vector<64x32xbf16>
    %cst = arith.constant dense<0.000000e+00> : vector<64x32xf32>
    %5 = tpu.matmul %1, %4, %cst {dimension_numbers = #tpu.dot_dimension_numbers<[1], [0], [0], [1], [0, 0, 1, 1], [], []>} : vector<64x64xbf16>, vector<64x32xbf16>, vector<64x32xf32> -> vector<64x32xf32>
    %6 = arith.addf %3, %5 : vector<64x32xf32>
    %7 = arith.truncf %5 : vector<64x32xf32> to vector<64x32xbf16>
    %cst_5 = arith.constant dense<0.000000e+00> : vector<64x32xf32>
    %8 = tpu.matmul %1, %7, %cst_5 {dimension_numbers = #tpu.dot_dimension_numbers<[1], [0], [0], [1], [0, 0, 1, 1], [], []>} : vector<64x64xbf16>, vector<64x32xbf16>, vector<64x32xf32> -> vector<64x32xf32>
    %9 = arith.addf %6, %8 : vector<64x32xf32>
    %cst_6 = arith.constant 0.333333343 : f32
    %10 = vector.broadcast %cst_6 : f32 to vector<64x32xf32>
    %11 = arith.mulf %9, %10 : vector<64x32xf32>
    %c0_7 = arith.constant 0 : index
    %c0_8 = arith.constant 0 : index
    %c0_9 = arith.constant 0 : index
    %12 = vector.load %arg3[%c0_7, %c0_8, %c0_9] : memref<1x64x32xf32, #tpu.memory_space<vmem>>, vector<1x64x32xf32>
    %13 = vector.shape_cast %12 : vector<1x64x32xf32> to vector<64x32xf32>
    %14 = vector.shape_cast %11 : vector<64x32xf32> to vector<1x64x32xf32>
    tpu.vector_store %arg3[%c0_7, %c0_8, %c0_9], %14 {strides = array<i32>} : memref<1x64x32xf32, #tpu.memory_space<vmem>>, vector<1x64x32xf32>,
    return
  }
  func.func @transform_0(%arg0: i32) -> (i32, i32, i32) {
    %c0_i32 = arith.constant 0 : i32
    %c0_i32_0 = arith.constant 0 : i32
    %c0_i32_1 = arith.constant 0 : i32
    return %arg0, %c0_i32, %c0_i32_0 : i32, i32, i32
  }
  func.func @transform_1(%arg0: i32) -> (i32, i32, i32) {
    %c0_i32 = arith.constant 0 : i32
    %c0_i32_0 = arith.constant 0 : i32
    %c0_i32_1 = arith.constant 0 : i32
    return %arg0, %c0_i32, %c0_i32_0 : i32, i32, i32
  }
  func.func @transform_2(%arg0: i32) -> (i32, i32, i32) {
    %c0_i32 = arith.constant 0 : i32
    %c0_i32_0 = arith.constant 0 : i32
    %c0_i32_1 = arith.constant 0 : i32
    return %arg0, %c0_i32, %c0_i32_0 : i32, i32, i32
  }
}

module attributes {stable_mosaic.version = 11 : i64} {
  func.func @_batch_core_kernel(%arg0: memref<88x32xf32, #tpu.memory_space<vmem>>, %arg1: memref<32x24xf32, #tpu.memory_space<vmem>>, %arg2: memref<32x20xf32, #tpu.memory_space<vmem>>, %arg3: memref<576x128xf32, #tpu.memory_space<vmem>>, %arg4: memref<8x1280xf32, #tpu.memory_space<vmem>>, %arg5: memref<8x22xf32, #tpu.memory_space<vmem>>) attributes {dimension_semantics = [], scalar_prefetch = 0 : i64, scratch_operands = 0 : i64, tpu.core_type = #tpu.core_type<tc>} {
    %c0 = arith.constant 0 : index
    %c0_0 = arith.constant 0 : index
    %0 = vector.load %arg0[%c0, %c0_0] : memref<88x32xf32, #tpu.memory_space<vmem>>, vector<88x32xf32>
    %1 = vector.extract_strided_slice %0 {offsets = [0, 0], sizes = [8, 32], strides = [1, 1]} : vector<88x32xf32> to vector<8x32xf32>
    %2 = vector.extract_strided_slice %0 {offsets = [8, 0], sizes = [8, 32], strides = [1, 1]} : vector<88x32xf32> to vector<8x32xf32>
    %3 = vector.extract_strided_slice %0 {offsets = [16, 0], sizes = [8, 32], strides = [1, 1]} : vector<88x32xf32> to vector<8x32xf32>
    %4 = vector.extract_strided_slice %0 {offsets = [24, 0], sizes = [8, 32], strides = [1, 1]} : vector<88x32xf32> to vector<8x32xf32>
    %5 = vector.extract_strided_slice %0 {offsets = [32, 0], sizes = [8, 32], strides = [1, 1]} : vector<88x32xf32> to vector<8x32xf32>
    %6 = vector.extract_strided_slice %0 {offsets = [40, 0], sizes = [8, 32], strides = [1, 1]} : vector<88x32xf32> to vector<8x32xf32>
    %7 = vector.extract_strided_slice %0 {offsets = [48, 0], sizes = [8, 32], strides = [1, 1]} : vector<88x32xf32> to vector<8x32xf32>
    %8 = vector.extract_strided_slice %0 {offsets = [56, 0], sizes = [8, 32], strides = [1, 1]} : vector<88x32xf32> to vector<8x32xf32>
    %9 = vector.extract_strided_slice %0 {offsets = [72, 0], sizes = [8, 32], strides = [1, 1]} : vector<88x32xf32> to vector<8x32xf32>
    %c0_1 = arith.constant 0 : index
    %c0_2 = arith.constant 0 : index
    %10 = vector.load %arg3[%c0_1, %c0_2] : memref<576x128xf32, #tpu.memory_space<vmem>>, vector<32x64xf32>
    %cst = arith.constant dense<0.000000e+00> : vector<8x64xf32>
    %11 = tpu.matmul %3, %10, %cst {dimension_numbers = #tpu.dot_dimension_numbers<[1], [0], [0], [1], [0, 0, 1, 1], [], []>} : vector<8x32xf32>, vector<32x64xf32>, vector<8x64xf32> -> vector<8x64xf32>
    %c0_3 = arith.constant 0 : index
    %c0_4 = arith.constant 0 : index
    %12 = vector.load %arg4[%c0_3, %c0_4] : memref<8x1280xf32, #tpu.memory_space<vmem>>, vector<1x64xf32>
    %13 = vector.broadcast %12 : vector<1x64xf32> to vector<8x64xf32>
    %14 = arith.addf %11, %13 : vector<8x64xf32>
    %cst_5 = arith.constant 0.000000e+00 : f32
    %15 = vector.broadcast %cst_5 : f32 to vector<8x64xf32>
    %16 = arith.maximumf %14, %15 : vector<8x64xf32>
    %c32 = arith.constant 32 : index
    %c0_6 = arith.constant 0 : index
    %17 = vector.load %arg3[%c32, %c0_6] : memref<576x128xf32, #tpu.memory_space<vmem>>, vector<64x32xf32>
    %cst_7 = arith.constant dense<0.000000e+00> : vector<8x32xf32>
    %18 = tpu.matmul %16, %17, %cst_7 {dimension_numbers = #tpu.dot_dimension_numbers<[1], [0], [0], [1], [0, 0, 1, 1], [], []>} : vector<8x64xf32>, vector<64x32xf32>, vector<8x32xf32> -> vector<8x32xf32>
    %c0_8 = arith.constant 0 : index
    %c128 = arith.constant 128 : index
    %19 = vector.load %arg4[%c0_8, %c128] : memref<8x1280xf32, #tpu.memory_space<vmem>>, vector<1x32xf32>
    %20 = vector.broadcast %19 : vector<1x32xf32> to vector<8x32xf32>
    %21 = arith.addf %18, %20 : vector<8x32xf32>
    %c96 = arith.constant 96 : index
    %c0_9 = arith.constant 0 : index
    %22 = vector.load %arg3[%c96, %c0_9] : memref<576x128xf32, #tpu.memory_space<vmem>>, vector<64x32xf32>
    %cst_10 = arith.constant dense<0.000000e+00> : vector<8x32xf32>
    %23 = tpu.matmul %16, %22, %cst_10 {dimension_numbers = #tpu.dot_dimension_numbers<[1], [0], [0], [1], [0, 0, 1, 1], [], []>} : vector<8x64xf32>, vector<64x32xf32>, vector<8x32xf32> -> vector<8x32xf32>
    %c0_11 = arith.constant 0 : index
    %c256 = arith.constant 256 : index
    %24 = vector.load %arg4[%c0_11, %c256] : memref<8x1280xf32, #tpu.memory_space<vmem>>, vector<1x32xf32>
    %25 = vector.broadcast %24 : vector<1x32xf32> to vector<8x32xf32>
    %26 = arith.addf %23, %25 : vector<8x32xf32>
    %27 = vector.extract_strided_slice %0 {offsets = [0, 0], sizes = [24, 32], strides = [1, 1]} : vector<88x32xf32> to vector<24x32xf32>
    %c160 = arith.constant 160 : index
    %c0_12 = arith.constant 0 : index
    %28 = vector.load %arg3[%c160, %c0_12] : memref<576x128xf32, #tpu.memory_space<vmem>>, vector<32x2xf32>
    %cst_13 = arith.constant dense<0.000000e+00> : vector<24x2xf32>
    %29 = tpu.matmul %27, %28, %cst_13 {dimension_numbers = #tpu.dot_dimension_numbers<[1], [0], [0], [1], [0, 0, 1, 1], [], []>} : vector<24x32xf32>, vector<32x2xf32>, vector<24x2xf32> -> vector<24x2xf32>
    %c0_14 = arith.constant 0 : index
    %c384 = arith.constant 384 : index
    %30 = vector.load %arg4[%c0_14, %c384] : memref<8x1280xf32, #tpu.memory_space<vmem>>, vector<1x2xf32>
    %31 = vector.broadcast %30 : vector<1x2xf32> to vector<24x2xf32>
    %32 = arith.addf %29, %31 : vector<24x2xf32>
    %33 = arith.negf %32 : vector<24x2xf32>
    %34 = math.exp %33 : vector<24x2xf32>
    %cst_15 = arith.constant 1.000000e+00 : f32
    %35 = vector.broadcast %cst_15 : f32 to vector<24x2xf32>
    %36 = arith.addf %35, %34 : vector<24x2xf32>
    %37 = arith.divf %35, %36 : vector<24x2xf32>
    %c192 = arith.constant 192 : index
    %c0_16 = arith.constant 0 : index
    %38 = vector.load %arg3[%c192, %c0_16] : memref<576x128xf32, #tpu.memory_space<vmem>>, vector<32x32xf32>
    %cst_17 = arith.constant dense<0.000000e+00> : vector<8x32xf32>
    %39 = tpu.matmul %1, %38, %cst_17 {dimension_numbers = #tpu.dot_dimension_numbers<[1], [0], [0], [1], [0, 0, 1, 1], [], []>} : vector<8x32xf32>, vector<32x32xf32>, vector<8x32xf32> -> vector<8x32xf32>
    %c224 = arith.constant 224 : index
    %c0_18 = arith.constant 0 : index
    %40 = vector.load %arg3[%c224, %c0_18] : memref<576x128xf32, #tpu.memory_space<vmem>>, vector<32x32xf32>
    %cst_19 = arith.constant dense<0.000000e+00> : vector<8x32xf32>
    %41 = tpu.matmul %26, %40, %cst_19 {dimension_numbers = #tpu.dot_dimension_numbers<[1], [0], [0], [1], [0, 0, 1, 1], [], []>} : vector<8x32xf32>, vector<32x32xf32>, vector<8x32xf32> -> vector<8x32xf32>
    %42 = arith.addf %39, %41 : vector<8x32xf32>
    %c256_20 = arith.constant 256 : index
    %c0_21 = arith.constant 0 : index
    %43 = vector.load %arg3[%c256_20, %c0_21] : memref<576x128xf32, #tpu.memory_space<vmem>>, vector<32x32xf32>
    %cst_22 = arith.constant dense<0.000000e+00> : vector<8x32xf32>
    %44 = tpu.matmul %21, %43, %cst_22 {dimension_numbers = #tpu.dot_dimension_numbers<[1], [0], [0], [1], [0, 0, 1, 1], [], []>} : vector<8x32xf32>, vector<32x32xf32>, vector<8x32xf32> -> vector<8x32xf32>
    %45 = arith.addf %42, %44 : vector<8x32xf32>
    %c0_23 = arith.constant 0 : index
    %c512 = arith.constant 512 : index
    %46 = vector.load %arg4[%c0_23, %c512] : memref<8x1280xf32, #tpu.memory_space<vmem>>, vector<1x32xf32>
    %47 = vector.broadcast %46 : vector<1x32xf32> to vector<8x32xf32>
    %48 = arith.addf %45, %47 : vector<8x32xf32>
    %cst_24 = arith.constant 0.000000e+00 : f32
    %49 = vector.broadcast %cst_24 : f32 to vector<8x32xf32>
    %50 = arith.maximumf %48, %49 : vector<8x32xf32>
    %c288 = arith.constant 288 : index
    %c0_25 = arith.constant 0 : index
    %51 = vector.load %arg3[%c288, %c0_25] : memref<576x128xf32, #tpu.memory_space<vmem>>, vector<32x3xf32>
    %cst_26 = arith.constant dense<0.000000e+00> : vector<8x3xf32>
    %52 = tpu.matmul %50, %51, %cst_26 {dimension_numbers = #tpu.dot_dimension_numbers<[1], [0], [0], [1], [0, 0, 1, 1], [], []>} : vector<8x32xf32>, vector<32x3xf32>, vector<8x3xf32> -> vector<8x3xf32>
    %c0_27 = arith.constant 0 : index
    %c640 = arith.constant 640 : index
    %53 = vector.load %arg4[%c0_27, %c640] : memref<8x1280xf32, #tpu.memory_space<vmem>>, vector<1x3xf32>
    %54 = vector.broadcast %53 : vector<1x3xf32> to vector<8x3xf32>
    %55 = arith.addf %52, %54 : vector<8x3xf32>
    %cst_28 = arith.constant dense<0xFF800000> : vector<8xf32>
    %56 = vector.multi_reduction <maximumf>, %55, %cst_28 [1] : vector<8x3xf32> to vector<8xf32>
    %57 = vector.shape_cast %56 : vector<8xf32> to vector<8x1xf32>
    %58 = vector.broadcast %57 : vector<8x1xf32> to vector<8x3xf32>
    %59 = arith.subf %55, %58 : vector<8x3xf32>
    %60 = math.exp %59 : vector<8x3xf32>
    %cst_29 = arith.constant dense<0.000000e+00> : vector<8xf32>
    %61 = vector.multi_reduction <add>, %60, %cst_29 [1] : vector<8x3xf32> to vector<8xf32>
    %62 = vector.shape_cast %61 : vector<8xf32> to vector<8x1xf32>
    %63 = vector.broadcast %62 : vector<8x1xf32> to vector<8x3xf32>
    %64 = arith.divf %60, %63 : vector<8x3xf32>
    %65 = vector.extract_strided_slice %64 {offsets = [0, 0], sizes = [8, 1], strides = [1, 1]} : vector<8x3xf32> to vector<8x1xf32>
    %66 = vector.broadcast %65 : vector<8x1xf32> to vector<8x32xf32>
    %67 = arith.mulf %1, %66 : vector<8x32xf32>
    %68 = vector.extract_strided_slice %64 {offsets = [0, 1], sizes = [8, 1], strides = [1, 1]} : vector<8x3xf32> to vector<8x1xf32>
    %69 = vector.broadcast %68 : vector<8x1xf32> to vector<8x32xf32>
    %70 = arith.mulf %26, %69 : vector<8x32xf32>
    %71 = arith.addf %67, %70 : vector<8x32xf32>
    %72 = vector.extract_strided_slice %64 {offsets = [0, 2], sizes = [8, 1], strides = [1, 1]} : vector<8x3xf32> to vector<8x1xf32>
    %73 = vector.broadcast %72 : vector<8x1xf32> to vector<8x32xf32>
    %74 = arith.mulf %21, %73 : vector<8x32xf32>
    %75 = arith.addf %71, %74 : vector<8x32xf32>
    %c320 = arith.constant 320 : index
    %c0_30 = arith.constant 0 : index
    %76 = vector.load %arg3[%c320, %c0_30] : memref<576x128xf32, #tpu.memory_space<vmem>>, vector<32x32xf32>
    %cst_31 = arith.constant dense<0.000000e+00> : vector<8x32xf32>
    %77 = tpu.matmul %2, %76, %cst_31 {dimension_numbers = #tpu.dot_dimension_numbers<[1], [0], [0], [1], [0, 0, 1, 1], [], []>} : vector<8x32xf32>, vector<32x32xf32>, vector<8x32xf32> -> vector<8x32xf32>
    %c352 = arith.constant 352 : index
    %c0_32 = arith.constant 0 : index
    %78 = vector.load %arg3[%c352, %c0_32] : memref<576x128xf32, #tpu.memory_space<vmem>>, vector<32x32xf32>
    %cst_33 = arith.constant dense<0.000000e+00> : vector<8x32xf32>
    %79 = tpu.matmul %26, %78, %cst_33 {dimension_numbers = #tpu.dot_dimension_numbers<[1], [0], [0], [1], [0, 0, 1, 1], [], []>} : vector<8x32xf32>, vector<32x32xf32>, vector<8x32xf32> -> vector<8x32xf32>
    %80 = arith.addf %77, %79 : vector<8x32xf32>
    %c384_34 = arith.constant 384 : index
    %c0_35 = arith.constant 0 : index
    %81 = vector.load %arg3[%c384_34, %c0_35] : memref<576x128xf32, #tpu.memory_space<vmem>>, vector<32x32xf32>
    %cst_36 = arith.constant dense<0.000000e+00> : vector<8x32xf32>
    %82 = tpu.matmul %21, %81, %cst_36 {dimension_numbers = #tpu.dot_dimension_numbers<[1], [0], [0], [1], [0, 0, 1, 1], [], []>} : vector<8x32xf32>, vector<32x32xf32>, vector<8x32xf32> -> vector<8x32xf32>
    %83 = arith.addf %80, %82 : vector<8x32xf32>
    %c0_37 = arith.constant 0 : index
    %c768 = arith.constant 768 : index
    %84 = vector.load %arg4[%c0_37, %c768] : memref<8x1280xf32, #tpu.memory_space<vmem>>, vector<1x32xf32>
    %85 = vector.broadcast %84 : vector<1x32xf32> to vector<8x32xf32>
    %86 = arith.addf %83, %85 : vector<8x32xf32>
    %cst_38 = arith.constant 0.000000e+00 : f32
    %87 = vector.broadcast %cst_38 : f32 to vector<8x32xf32>
    %88 = arith.maximumf %86, %87 : vector<8x32xf32>
    %c416 = arith.constant 416 : index
    %c0_39 = arith.constant 0 : index
    %89 = vector.load %arg3[%c416, %c0_39] : memref<576x128xf32, #tpu.memory_space<vmem>>, vector<32x3xf32>
    %cst_40 = arith.constant dense<0.000000e+00> : vector<8x3xf32>
    %90 = tpu.matmul %88, %89, %cst_40 {dimension_numbers = #tpu.dot_dimension_numbers<[1], [0], [0], [1], [0, 0, 1, 1], [], []>} : vector<8x32xf32>, vector<32x3xf32>, vector<8x3xf32> -> vector<8x3xf32>
    %c0_41 = arith.constant 0 : index
    %c896 = arith.constant 896 : index
    %91 = vector.load %arg4[%c0_41, %c896] : memref<8x1280xf32, #tpu.memory_space<vmem>>, vector<1x3xf32>
    %92 = vector.broadcast %91 : vector<1x3xf32> to vector<8x3xf32>
    %93 = arith.addf %90, %92 : vector<8x3xf32>
    %cst_42 = arith.constant dense<0xFF800000> : vector<8xf32>
    %94 = vector.multi_reduction <maximumf>, %93, %cst_42 [1] : vector<8x3xf32> to vector<8xf32>
    %95 = vector.shape_cast %94 : vector<8xf32> to vector<8x1xf32>
    %96 = vector.broadcast %95 : vector<8x1xf32> to vector<8x3xf32>
    %97 = arith.subf %93, %96 : vector<8x3xf32>
    %98 = math.exp %97 : vector<8x3xf32>
    %cst_43 = arith.constant dense<0.000000e+00> : vector<8xf32>
    %99 = vector.multi_reduction <add>, %98, %cst_43 [1] : vector<8x3xf32> to vector<8xf32>
    %100 = vector.shape_cast %99 : vector<8xf32> to vector<8x1xf32>
    %101 = vector.broadcast %100 : vector<8x1xf32> to vector<8x3xf32>
    %102 = arith.divf %98, %101 : vector<8x3xf32>
    %103 = vector.extract_strided_slice %102 {offsets = [0, 0], sizes = [8, 1], strides = [1, 1]} : vector<8x3xf32> to vector<8x1xf32>
    %104 = vector.broadcast %103 : vector<8x1xf32> to vector<8x32xf32>
    %105 = arith.mulf %2, %104 : vector<8x32xf32>
    %106 = vector.extract_strided_slice %102 {offsets = [0, 1], sizes = [8, 1], strides = [1, 1]} : vector<8x3xf32> to vector<8x1xf32>
    %107 = vector.broadcast %106 : vector<8x1xf32> to vector<8x32xf32>
    %108 = arith.mulf %26, %107 : vector<8x32xf32>
    %109 = arith.addf %105, %108 : vector<8x32xf32>
    %110 = vector.extract_strided_slice %102 {offsets = [0, 2], sizes = [8, 1], strides = [1, 1]} : vector<8x3xf32> to vector<8x1xf32>
    %111 = vector.broadcast %110 : vector<8x1xf32> to vector<8x32xf32>
    %112 = arith.mulf %21, %111 : vector<8x32xf32>
    %113 = arith.addf %109, %112 : vector<8x32xf32>
    %114 = vector.extract_strided_slice %0 {offsets = [24, 0], sizes = [16, 32], strides = [1, 1]} : vector<88x32xf32> to vector<16x32xf32>
    %c448 = arith.constant 448 : index
    %c0_44 = arith.constant 0 : index
    %115 = vector.load %arg3[%c448, %c0_44] : memref<576x128xf32, #tpu.memory_space<vmem>>, vector<32x32xf32>
    %cst_45 = arith.constant dense<0.000000e+00> : vector<16x32xf32>
    %116 = tpu.matmul %114, %115, %cst_45 {dimension_numbers = #tpu.dot_dimension_numbers<[1], [0], [0], [1], [0, 0, 1, 1], [], []>} : vector<16x32xf32>, vector<32x32xf32>, vector<16x32xf32> -> vector<16x32xf32>
    %117 = vector.extract_strided_slice %0 {offsets = [56, 0], sizes = [16, 32], strides = [1, 1]} : vector<88x32xf32> to vector<16x32xf32>
    %c480 = arith.constant 480 : index
    %c0_46 = arith.constant 0 : index
    %118 = vector.load %arg3[%c480, %c0_46] : memref<576x128xf32, #tpu.memory_space<vmem>>, vector<32x32xf32>
    %cst_47 = arith.constant dense<0.000000e+00> : vector<16x32xf32>
    %119 = tpu.matmul %117, %118, %cst_47 {dimension_numbers = #tpu.dot_dimension_numbers<[1], [0], [0], [1], [0, 0, 1, 1], [], []>} : vector<16x32xf32>, vector<32x32xf32>, vector<16x32xf32> -> vector<16x32xf32>
    %120 = arith.addf %116, %119 : vector<16x32xf32>
    %c0_48 = arith.constant 0 : index
    %c1024 = arith.constant 1024 : index
    %121 = vector.load %arg4[%c0_48, %c1024] : memref<8x1280xf32, #tpu.memory_space<vmem>>, vector<1x32xf32>
    %122 = vector.broadcast %121 : vector<1x32xf32> to vector<16x32xf32>
    %123 = arith.addf %120, %122 : vector<16x32xf32>
    %124 = vector.extract_strided_slice %0 {offsets = [40, 0], sizes = [16, 32], strides = [1, 1]} : vector<88x32xf32> to vector<16x32xf32>
    %c512_49 = arith.constant 512 : index
    %c0_50 = arith.constant 0 : index
    %125 = vector.load %arg3[%c512_49, %c0_50] : memref<576x128xf32, #tpu.memory_space<vmem>>, vector<32x32xf32>
    %cst_51 = arith.constant dense<0.000000e+00> : vector<16x32xf32>
    %126 = tpu.matmul %124, %125, %cst_51 {dimension_numbers = #tpu.dot_dimension_numbers<[1], [0], [0], [1], [0, 0, 1, 1], [], []>} : vector<16x32xf32>, vector<32x32xf32>, vector<16x32xf32> -> vector<16x32xf32>
    %127 = vector.extract_strided_slice %0 {offsets = [72, 0], sizes = [16, 32], strides = [1, 1]} : vector<88x32xf32> to vector<16x32xf32>
    %c544 = arith.constant 544 : index
    %c0_52 = arith.constant 0 : index
    %128 = vector.load %arg3[%c544, %c0_52] : memref<576x128xf32, #tpu.memory_space<vmem>>, vector<32x32xf32>
    %cst_53 = arith.constant dense<0.000000e+00> : vector<16x32xf32>
    %129 = tpu.matmul %127, %128, %cst_53 {dimension_numbers = #tpu.dot_dimension_numbers<[1], [0], [0], [1], [0, 0, 1, 1], [], []>} : vector<16x32xf32>, vector<32x32xf32>, vector<16x32xf32> -> vector<16x32xf32>
    %130 = arith.addf %126, %129 : vector<16x32xf32>
    %c0_54 = arith.constant 0 : index
    %c1152 = arith.constant 1152 : index
    %131 = vector.load %arg4[%c0_54, %c1152] : memref<8x1280xf32, #tpu.memory_space<vmem>>, vector<1x32xf32>
    %132 = vector.broadcast %131 : vector<1x32xf32> to vector<16x32xf32>
    %133 = arith.addf %130, %132 : vector<16x32xf32>
    %134 = vector.extract_strided_slice %123 {offsets = [0, 0], sizes = [8, 32], strides = [1, 1]} : vector<16x32xf32> to vector<8x32xf32>
    %135 = vector.extract_strided_slice %123 {offsets = [8, 0], sizes = [8, 32], strides = [1, 1]} : vector<16x32xf32> to vector<8x32xf32>
    %136 = vector.extract_strided_slice %133 {offsets = [0, 0], sizes = [8, 32], strides = [1, 1]} : vector<16x32xf32> to vector<8x32xf32>
    %137 = vector.extract_strided_slice %133 {offsets = [8, 0], sizes = [8, 32], strides = [1, 1]} : vector<16x32xf32> to vector<8x32xf32>
    %138 = tpu.concatenate %21, %26 in 0 : vector<8x32xf32>, vector<8x32xf32> -> vector<16x32xf32>
    %c0_55 = arith.constant 0 : index
    %c0_56 = arith.constant 0 : index
    %139 = vector.load %arg1[%c0_55, %c0_56] : memref<32x24xf32, #tpu.memory_space<vmem>>, vector<32x24xf32>
    %cst_57 = arith.constant dense<0.000000e+00> : vector<16x24xf32>
    %140 = tpu.matmul %138, %139, %cst_57 {dimension_numbers = #tpu.dot_dimension_numbers<[1], [0], [0], [1], [0, 0, 1, 1], [], []>} : vector<16x32xf32>, vector<32x24xf32>, vector<16x24xf32> -> vector<16x24xf32>
    %cst_58 = arith.constant 5.000000e+00 : f32
    %141 = vector.broadcast %cst_58 : f32 to vector<16x24xf32>
    %142 = arith.mulf %140, %141 : vector<16x24xf32>
    %c0_59 = arith.constant 0 : index
    %c0_60 = arith.constant 0 : index
    %143 = vector.load %arg2[%c0_59, %c0_60] : memref<32x20xf32, #tpu.memory_space<vmem>>, vector<32x20xf32>
    %cst_61 = arith.constant dense<0.000000e+00> : vector<16x20xf32>
    %144 = tpu.matmul %138, %143, %cst_61 {dimension_numbers = #tpu.dot_dimension_numbers<[1], [0], [0], [1], [0, 0, 1, 1], [], []>} : vector<16x32xf32>, vector<32x20xf32>, vector<16x20xf32> -> vector<16x20xf32>
    %cst_62 = arith.constant 5.000000e+00 : f32
    %145 = vector.broadcast %cst_62 : f32 to vector<16x20xf32>
    %146 = arith.mulf %144, %145 : vector<16x20xf32>
    %cst_63 = arith.constant dense<0xFF800000> : vector<16xf32>
    %147 = vector.multi_reduction <maximumf>, %142, %cst_63 [1] : vector<16x24xf32> to vector<16xf32>
    %148 = vector.shape_cast %147 : vector<16xf32> to vector<16x1xf32>
    %149 = vector.broadcast %148 : vector<16x1xf32> to vector<16x24xf32>
    %150 = arith.subf %142, %149 : vector<16x24xf32>
    %151 = math.exp %150 : vector<16x24xf32>
    %cst_64 = arith.constant dense<0.000000e+00> : vector<16xf32>
    %152 = vector.multi_reduction <add>, %151, %cst_64 [1] : vector<16x24xf32> to vector<16xf32>
    %153 = vector.shape_cast %152 : vector<16xf32> to vector<16x1xf32>
    %154 = math.log %153 : vector<16x1xf32>
    %155 = arith.addf %148, %154 : vector<16x1xf32>
    %cst_65 = arith.constant dense<0xFF800000> : vector<16xf32>
    %156 = vector.multi_reduction <maximumf>, %146, %cst_65 [1] : vector<16x20xf32> to vector<16xf32>
    %157 = vector.shape_cast %156 : vector<16xf32> to vector<16x1xf32>
    %158 = vector.broadcast %157 : vector<16x1xf32> to vector<16x20xf32>
    %159 = arith.subf %146, %158 : vector<16x20xf32>
    %160 = math.exp %159 : vector<16x20xf32>
    %cst_66 = arith.constant dense<0.000000e+00> : vector<16xf32>
    %161 = vector.multi_reduction <add>, %160, %cst_66 [1] : vector<16x20xf32> to vector<16xf32>
    %162 = vector.shape_cast %161 : vector<16xf32> to vector<16x1xf32>
    %163 = math.log %162 : vector<16x1xf32>
    %164 = arith.addf %157, %163 : vector<16x1xf32>
    %165 = arith.mulf %26, %8 : vector<8x32xf32>
    %166 = arith.mulf %26, %9 : vector<8x32xf32>
    %167 = arith.mulf %21, %8 : vector<8x32xf32>
    %168 = arith.mulf %21, %9 : vector<8x32xf32>
    %169 = arith.mulf %75, %134 : vector<8x32xf32>
    %170 = arith.mulf %75, %135 : vector<8x32xf32>
    %171 = arith.mulf %113, %136 : vector<8x32xf32>
    %172 = arith.mulf %113, %137 : vector<8x32xf32>
    %173 = arith.mulf %4, %8 : vector<8x32xf32>
    %174 = arith.mulf %5, %8 : vector<8x32xf32>
    %175 = arith.mulf %6, %9 : vector<8x32xf32>
    %176 = arith.mulf %7, %9 : vector<8x32xf32>
    %177 = arith.mulf %4, %4 : vector<8x32xf32>
    %178 = arith.mulf %5, %5 : vector<8x32xf32>
    %179 = arith.mulf %8, %8 : vector<8x32xf32>
    %180 = arith.mulf %6, %6 : vector<8x32xf32>
    %181 = arith.mulf %7, %7 : vector<8x32xf32>
    %182 = arith.mulf %9, %9 : vector<8x32xf32>
    %183 = tpu.concatenate %165, %166, %167, %168, %169, %170, %171, %172, %173, %174, %175, %176, %177, %178, %179, %180 in 0 : vector<8x32xf32>, vector<8x32xf32>, vector<8x32xf32>, vector<8x32xf32>, vector<8x32xf32>, vector<8x32xf32>, vector<8x32xf32>, vector<8x32xf32>, vector<8x32xf32>, vector<8x32xf32>, vector<8x32xf32>, vector<8x32xf32>, vector<8x32xf32>, vector<8x32xf32>, vector<8x32xf32>, vector<8x32xf32> -> vector<128x32xf32>
    %184 = tpu.concatenate %181, %182 in 0 : vector<8x32xf32>, vector<8x32xf32> -> vector<16x32xf32>
    %185 = tpu.concatenate %183, %184 in 0 : vector<128x32xf32>, vector<16x32xf32> -> vector<144x32xf32>
    %cst_67 = arith.constant 1.000000e+00 : f32
    %186 = vector.broadcast %cst_67 : f32 to vector<32x1xf32>
    %cst_68 = arith.constant dense<0.000000e+00> : vector<144x1xf32>
    %187 = tpu.matmul %185, %186, %cst_68 {dimension_numbers = #tpu.dot_dimension_numbers<[1], [0], [0], [1], [0, 0, 1, 1], [], []>} : vector<144x32xf32>, vector<32x1xf32>, vector<144x1xf32> -> vector<144x1xf32>
    %188 = vector.extract_strided_slice %187 {offsets = [96, 0], sizes = [8, 1], strides = [1, 1]} : vector<144x1xf32> to vector<8x1xf32>
    %189 = math.sqrt %188 : vector<8x1xf32>
    %cst_69 = arith.constant 9.99999993E-9 : f32
    %190 = vector.broadcast %cst_69 : f32 to vector<8x1xf32>
    %191 = arith.maximumf %189, %190 : vector<8x1xf32>
    %192 = vector.extract_strided_slice %187 {offsets = [104, 0], sizes = [8, 1], strides = [1, 1]} : vector<144x1xf32> to vector<8x1xf32>
    %193 = math.sqrt %192 : vector<8x1xf32>
    %cst_70 = arith.constant 9.99999993E-9 : f32
    %194 = vector.broadcast %cst_70 : f32 to vector<8x1xf32>
    %195 = arith.maximumf %193, %194 : vector<8x1xf32>
    %196 = vector.extract_strided_slice %187 {offsets = [112, 0], sizes = [8, 1], strides = [1, 1]} : vector<144x1xf32> to vector<8x1xf32>
    %197 = math.sqrt %196 : vector<8x1xf32>
    %cst_71 = arith.constant 9.99999993E-9 : f32
    %198 = vector.broadcast %cst_71 : f32 to vector<8x1xf32>
    %199 = arith.maximumf %197, %198 : vector<8x1xf32>
    %200 = vector.extract_strided_slice %187 {offsets = [120, 0], sizes = [8, 1], strides = [1, 1]} : vector<144x1xf32> to vector<8x1xf32>
    %201 = math.sqrt %200 : vector<8x1xf32>
    %cst_72 = arith.constant 9.99999993E-9 : f32
    %202 = vector.broadcast %cst_72 : f32 to vector<8x1xf32>
    %203 = arith.maximumf %201, %202 : vector<8x1xf32>
    %204 = vector.extract_strided_slice %187 {offsets = [128, 0], sizes = [8, 1], strides = [1, 1]} : vector<144x1xf32> to vector<8x1xf32>
    %205 = math.sqrt %204 : vector<8x1xf32>
    %cst_73 = arith.constant 9.99999993E-9 : f32
    %206 = vector.broadcast %cst_73 : f32 to vector<8x1xf32>
    %207 = arith.maximumf %205, %206 : vector<8x1xf32>
    %208 = vector.extract_strided_slice %187 {offsets = [136, 0], sizes = [8, 1], strides = [1, 1]} : vector<144x1xf32> to vector<8x1xf32>
    %209 = math.sqrt %208 : vector<8x1xf32>
    %cst_74 = arith.constant 9.99999993E-9 : f32
    %210 = vector.broadcast %cst_74 : f32 to vector<8x1xf32>
    %211 = arith.maximumf %209, %210 : vector<8x1xf32>
    %212 = vector.extract_strided_slice %187 {offsets = [0, 0], sizes = [8, 1], strides = [1, 1]} : vector<144x1xf32> to vector<8x1xf32>
    %c0_75 = arith.constant 0 : index
    %c0_76 = arith.constant 0 : index
    %213 = vector.load %arg5[%c0_75, %c0_76] : memref<8x22xf32, #tpu.memory_space<vmem>>, vector<8x1xf32>
    tpu.vector_store %arg5[%c0_75, %c0_76], %212 {strides = array<i32>} : memref<8x22xf32, #tpu.memory_space<vmem>>, vector<8x1xf32>,
    %214 = vector.extract_strided_slice %187 {offsets = [8, 0], sizes = [8, 1], strides = [1, 1]} : vector<144x1xf32> to vector<8x1xf32>
    %c0_77 = arith.constant 0 : index
    %c1 = arith.constant 1 : index
    %215 = vector.load %arg5[%c0_77, %c1] : memref<8x22xf32, #tpu.memory_space<vmem>>, vector<8x1xf32>
    tpu.vector_store %arg5[%c0_77, %c1], %214 {strides = array<i32>} : memref<8x22xf32, #tpu.memory_space<vmem>>, vector<8x1xf32>,
    %216 = vector.extract_strided_slice %187 {offsets = [16, 0], sizes = [8, 1], strides = [1, 1]} : vector<144x1xf32> to vector<8x1xf32>
    %c0_78 = arith.constant 0 : index
    %c2 = arith.constant 2 : index
    %217 = vector.load %arg5[%c0_78, %c2] : memref<8x22xf32, #tpu.memory_space<vmem>>, vector<8x1xf32>
    tpu.vector_store %arg5[%c0_78, %c2], %216 {strides = array<i32>} : memref<8x22xf32, #tpu.memory_space<vmem>>, vector<8x1xf32>,
    %218 = vector.extract_strided_slice %187 {offsets = [24, 0], sizes = [8, 1], strides = [1, 1]} : vector<144x1xf32> to vector<8x1xf32>
    %c0_79 = arith.constant 0 : index
    %c3 = arith.constant 3 : index
    %219 = vector.load %arg5[%c0_79, %c3] : memref<8x22xf32, #tpu.memory_space<vmem>>, vector<8x1xf32>
    tpu.vector_store %arg5[%c0_79, %c3], %218 {strides = array<i32>} : memref<8x22xf32, #tpu.memory_space<vmem>>, vector<8x1xf32>,
    %220 = vector.extract_strided_slice %155 {offsets = [0, 0], sizes = [8, 1], strides = [1, 1]} : vector<16x1xf32> to vector<8x1xf32>
    %c0_80 = arith.constant 0 : index
    %c4 = arith.constant 4 : index
    %221 = vector.load %arg5[%c0_80, %c4] : memref<8x22xf32, #tpu.memory_space<vmem>>, vector<8x1xf32>
    tpu.vector_store %arg5[%c0_80, %c4], %220 {strides = array<i32>} : memref<8x22xf32, #tpu.memory_space<vmem>>, vector<8x1xf32>,
    %222 = vector.extract_strided_slice %164 {offsets = [0, 0], sizes = [8, 1], strides = [1, 1]} : vector<16x1xf32> to vector<8x1xf32>
    %c0_81 = arith.constant 0 : index
    %c5 = arith.constant 5 : index
    %223 = vector.load %arg5[%c0_81, %c5] : memref<8x22xf32, #tpu.memory_space<vmem>>, vector<8x1xf32>
    tpu.vector_store %arg5[%c0_81, %c5], %222 {strides = array<i32>} : memref<8x22xf32, #tpu.memory_space<vmem>>, vector<8x1xf32>,
    %224 = vector.extract_strided_slice %155 {offsets = [8, 0], sizes = [8, 1], strides = [1, 1]} : vector<16x1xf32> to vector<8x1xf32>
    %c0_82 = arith.constant 0 : index
    %c6 = arith.constant 6 : index
    %225 = vector.load %arg5[%c0_82, %c6] : memref<8x22xf32, #tpu.memory_space<vmem>>, vector<8x1xf32>
    tpu.vector_store %arg5[%c0_82, %c6], %224 {strides = array<i32>} : memref<8x22xf32, #tpu.memory_space<vmem>>, vector<8x1xf32>,
    %226 = vector.extract_strided_slice %164 {offsets = [8, 0], sizes = [8, 1], strides = [1, 1]} : vector<16x1xf32> to vector<8x1xf32>
    %c0_83 = arith.constant 0 : index
    %c7 = arith.constant 7 : index
    %227 = vector.load %arg5[%c0_83, %c7] : memref<8x22xf32, #tpu.memory_space<vmem>>, vector<8x1xf32>
    tpu.vector_store %arg5[%c0_83, %c7], %226 {strides = array<i32>} : memref<8x22xf32, #tpu.memory_space<vmem>>, vector<8x1xf32>,
    %228 = vector.extract_strided_slice %187 {offsets = [32, 0], sizes = [8, 1], strides = [1, 1]} : vector<144x1xf32> to vector<8x1xf32>
    %c0_84 = arith.constant 0 : index
    %c8 = arith.constant 8 : index
    %229 = vector.load %arg5[%c0_84, %c8] : memref<8x22xf32, #tpu.memory_space<vmem>>, vector<8x1xf32>
    tpu.vector_store %arg5[%c0_84, %c8], %228 {strides = array<i32>} : memref<8x22xf32, #tpu.memory_space<vmem>>, vector<8x1xf32>,
    %230 = vector.extract_strided_slice %187 {offsets = [40, 0], sizes = [8, 1], strides = [1, 1]} : vector<144x1xf32> to vector<8x1xf32>
    %c0_85 = arith.constant 0 : index
    %c9 = arith.constant 9 : index
    %231 = vector.load %arg5[%c0_85, %c9] : memref<8x22xf32, #tpu.memory_space<vmem>>, vector<8x1xf32>
    tpu.vector_store %arg5[%c0_85, %c9], %230 {strides = array<i32>} : memref<8x22xf32, #tpu.memory_space<vmem>>, vector<8x1xf32>,
    %232 = vector.extract_strided_slice %187 {offsets = [48, 0], sizes = [8, 1], strides = [1, 1]} : vector<144x1xf32> to vector<8x1xf32>
    %c0_86 = arith.constant 0 : index
    %c10 = arith.constant 10 : index
    %233 = vector.load %arg5[%c0_86, %c10] : memref<8x22xf32, #tpu.memory_space<vmem>>, vector<8x1xf32>
    tpu.vector_store %arg5[%c0_86, %c10], %232 {strides = array<i32>} : memref<8x22xf32, #tpu.memory_space<vmem>>, vector<8x1xf32>,
    %234 = vector.extract_strided_slice %187 {offsets = [56, 0], sizes = [8, 1], strides = [1, 1]} : vector<144x1xf32> to vector<8x1xf32>
    %c0_87 = arith.constant 0 : index
    %c11 = arith.constant 11 : index
    %235 = vector.load %arg5[%c0_87, %c11] : memref<8x22xf32, #tpu.memory_space<vmem>>, vector<8x1xf32>
    tpu.vector_store %arg5[%c0_87, %c11], %234 {strides = array<i32>} : memref<8x22xf32, #tpu.memory_space<vmem>>, vector<8x1xf32>,
    %236 = vector.extract_strided_slice %187 {offsets = [64, 0], sizes = [8, 1], strides = [1, 1]} : vector<144x1xf32> to vector<8x1xf32>
    %237 = arith.mulf %191, %199 : vector<8x1xf32>
    %238 = arith.divf %236, %237 : vector<8x1xf32>
    %c0_88 = arith.constant 0 : index
    %c12 = arith.constant 12 : index
    %239 = vector.load %arg5[%c0_88, %c12] : memref<8x22xf32, #tpu.memory_space<vmem>>, vector<8x1xf32>
    tpu.vector_store %arg5[%c0_88, %c12], %238 {strides = array<i32>} : memref<8x22xf32, #tpu.memory_space<vmem>>, vector<8x1xf32>,
    %240 = vector.extract_strided_slice %187 {offsets = [72, 0], sizes = [8, 1], strides = [1, 1]} : vector<144x1xf32> to vector<8x1xf32>
    %241 = arith.mulf %195, %199 : vector<8x1xf32>
    %242 = arith.divf %240, %241 : vector<8x1xf32>
    %c0_89 = arith.constant 0 : index
    %c13 = arith.constant 13 : index
    %243 = vector.load %arg5[%c0_89, %c13] : memref<8x22xf32, #tpu.memory_space<vmem>>, vector<8x1xf32>
    tpu.vector_store %arg5[%c0_89, %c13], %242 {strides = array<i32>} : memref<8x22xf32, #tpu.memory_space<vmem>>, vector<8x1xf32>,
    %244 = vector.extract_strided_slice %187 {offsets = [80, 0], sizes = [8, 1], strides = [1, 1]} : vector<144x1xf32> to vector<8x1xf32>
    %245 = arith.mulf %203, %211 : vector<8x1xf32>
    %246 = arith.divf %244, %245 : vector<8x1xf32>
    %c0_90 = arith.constant 0 : index
    %c14 = arith.constant 14 : index
    %247 = vector.load %arg5[%c0_90, %c14] : memref<8x22xf32, #tpu.memory_space<vmem>>, vector<8x1xf32>
    tpu.vector_store %arg5[%c0_90, %c14], %246 {strides = array<i32>} : memref<8x22xf32, #tpu.memory_space<vmem>>, vector<8x1xf32>,
    %248 = vector.extract_strided_slice %187 {offsets = [88, 0], sizes = [8, 1], strides = [1, 1]} : vector<144x1xf32> to vector<8x1xf32>
    %249 = arith.mulf %207, %211 : vector<8x1xf32>
    %250 = arith.divf %248, %249 : vector<8x1xf32>
    %c0_91 = arith.constant 0 : index
    %c15 = arith.constant 15 : index
    %251 = vector.load %arg5[%c0_91, %c15] : memref<8x22xf32, #tpu.memory_space<vmem>>, vector<8x1xf32>
    tpu.vector_store %arg5[%c0_91, %c15], %250 {strides = array<i32>} : memref<8x22xf32, #tpu.memory_space<vmem>>, vector<8x1xf32>,
    %252 = vector.extract_strided_slice %37 {offsets = [0, 0], sizes = [8, 2], strides = [1, 1]} : vector<24x2xf32> to vector<8x2xf32>
    %c0_92 = arith.constant 0 : index
    %c16 = arith.constant 16 : index
    %253 = vector.load %arg5[%c0_92, %c16] : memref<8x22xf32, #tpu.memory_space<vmem>>, vector<8x2xf32>
    tpu.vector_store %arg5[%c0_92, %c16], %252 {strides = array<i32>} : memref<8x22xf32, #tpu.memory_space<vmem>>, vector<8x2xf32>,
    %254 = vector.extract_strided_slice %37 {offsets = [8, 0], sizes = [8, 2], strides = [1, 1]} : vector<24x2xf32> to vector<8x2xf32>
    %c0_93 = arith.constant 0 : index
    %c18 = arith.constant 18 : index
    %255 = vector.load %arg5[%c0_93, %c18] : memref<8x22xf32, #tpu.memory_space<vmem>>, vector<8x2xf32>
    tpu.vector_store %arg5[%c0_93, %c18], %254 {strides = array<i32>} : memref<8x22xf32, #tpu.memory_space<vmem>>, vector<8x2xf32>,
    %256 = vector.extract_strided_slice %37 {offsets = [16, 0], sizes = [8, 2], strides = [1, 1]} : vector<24x2xf32> to vector<8x2xf32>
    %c0_94 = arith.constant 0 : index
    %c20 = arith.constant 20 : index
    %257 = vector.load %arg5[%c0_94, %c20] : memref<8x22xf32, #tpu.memory_space<vmem>>, vector<8x2xf32>
    tpu.vector_store %arg5[%c0_94, %c20], %256 {strides = array<i32>} : memref<8x22xf32, #tpu.memory_space<vmem>>, vector<8x2xf32>,
    return
  }
}

</mosaic_0001>

<bundles_post_ra>
// kernel: copd_forward.2
= control target key start
LH: loop header
LB: loop body
LE: loop exit
PB: predicated region body
PF: predicated region fallthrough
CT: control target
= control target key end

     0   :  { %s563_s9 = smov 0   ;;  %s625_s0 = inlined_call_operand.vmem [shape: bf16[3,64,64], index: 0, kind: input, shape index: {}]   ;;  %s626_s1 = inlined_call_operand.vmem [shape: f32[3,64,32], index: 1, kind: input, shape index: {}]   ;;  %s627_s2 = inlined_call_operand.vmem [shape: f32[3,64,32], index: 2, kind: output, shape index: {}]  }
   0x1 LB: > { %s452_s10 = sadd.s32 4294967295, %s546_s9   ;;  %p456_p0 = scmp.ge.s32.totalorder %s546_s9, 1  ;;  %s546_s9 = sphi %s563_s9, %s12_s9  }
   0x2   : > { %p122_p1 = scmp.lt.s32.totalorder %s546_s9, 4 }
   0x4   : > { %p123_p2 = pnand %p456_p0, %p122_p1 }
   0x5   : > { %p149_p3 = scmp.lt.s32.totalorder (!%p123_p2), %s452_s10, 2  ;;  %vm205_vm0 = vcmask (!%p123_p2), 523264   ;;  %vm376_vm1 = vcmask (!%p123_p2), 261120  }
   0x6   : > { %126 = sbr.rel (%p123_p2) target bundleno = 496 (0x1f0), region = 28 }
   0xd   : > { %s629_s10 = smov (!%p149_p3, %s452_s10), 2 }
   0xe   : > { %s478_s11 = sshll.u32 %s629_s10, 6  ;;  %s477_s12 = sshll.u32 %s629_s10, 5 }
   0xf   : > { %s158_s15 = scalar_lea.vmem %s626_s1, %s478_s11  ;;  %s153_s18 = scalar_lea.vmem %s625_s0, %s477_s12 }
  0x10   : > { %v173_v0 = vld [vmem:[%s158_s15] sm:$0xff]  ;;  %v174_v1 = vld [vmem:[%s158_s15 + $0x8] sm:$0xff]  ;;  %v175_v2 = vld [vmem:[%s158_s15 + $0x10] sm:$0xff]  ;;  %s602_s21 = scalar_lea.vmem %s627_s2, %s478_s11 }
  0x11   : > { %v181_v3 = vpack.c.bf16 %v174_v1, %v173_v0  ;;  %v176_v4 = vld [vmem:[%s158_s15 + $0x18] sm:$0xff]  ;;  %v583_v6 = vld [vmem:[%s158_s15 + $0x20] sm:$0xff]  ;;  %v585_v7 = vld [vmem:[%s158_s15 + $0x28] sm:$0xff] }
  0x12   : > { %v182_v5 = vpack.c.bf16 %v176_v4, %v175_v2  ;;  %v536_v8 = vld [vmem:[%s153_s18] sm:$0xff]   ;;  %v183_v9 = vpack.c.bf16 %v585_v7, %v583_v6  ;;  %v179_v10 = vld [vmem:[%s158_s15 + $0x30] sm:$0xff]  ;;  %v180_v11 = vld [vmem:[%s158_s15 + $0x38] sm:$0xff] }
  0x13   : > { %496 = vmatprep.subr.bf16.mxu0 %v181_v3  ;;  %504 = vmatprep.mubr.msk.bf16.mxu0 %vm205_vm0, %v536_v8  ;;  %v184_v12 = vpack.c.bf16 %v180_v11, %v179_v10  ;;  %v537_v13 = vld [vmem:[%s153_s18 + $0x8] sm:$0xff]   ;;  %v538_v14 = vld [vmem:[%s153_s18 + $0x10] sm:$0xff]   ;;  %v539_v15 = vld [vmem:[%s153_s18 + $0x18] sm:$0xff]  }
  0x14   : > { %497 = vmatpush3.bf16.msra.mxu0 %v181_v3  ;;  %520 = vmatprep.mubr.msk.bf16.mxu1 %vm205_vm0, %v536_v8 }
  0x15   : > { %498 = vmatprep.subr.bf16.mxu0 %v182_v5 }
  0x18   : > { %499 = vmatpush3.bf16.msra.mxu0 %v182_v5 }
  0x19   : > { %500 = vmatprep.subr.bf16.mxu0 %v183_v9 }
  0x1c   : > { %501 = vmatpush3.bf16.msra.mxu0 %v183_v9 }
  0x1d   : > { %502 = vmatprep.subr.bf16.mxu0 %v184_v12 }
  0x20   : > { %503 = vmatpush3.bf16.msra.mxu0 %v184_v12 }
  0x23   : > { %505 = vmatmul.mubr.msk.bf16.vlgmr.msra.gmra.mrb[0].mxu0 %vm205_vm0, %v537_v13 }
  0x24   : > { %508 = vmatprep.mubr.msk.bf16.mxu0 %vm205_vm0, %v538_v14 }
  0x2b   : > { %509 = vmatmul.mubr.msk.bf16.gmra.mrb[4].mxu0 %vm205_vm0, %v539_v15 }
  0xf6   : > { %v506_v16 = vpop.f32.mrb[0].mxu0 }
  0xf7   : > { %v252_v17 = vpop.f32.mrb[1].mxu0  ;;  %v285_v28 = vadd.f32 %v506_v16, %v175_v2 }
  0xf8   : > { %v507_v18 = vpop.f32.mrb[2].mxu0  ;;  %v283_v29 = vadd.f32 %v252_v17, %v173_v0 }
  0xf9   : > { %v292_v19 = vpack.c.bf16 %v507_v18, %v506_v16  ;;  %v255_v20 = vpop.f32.mrb[3].mxu0  ;;  %v286_v31 = vadd.f32 %v507_v18, %v176_v4 }
  0xfa   : > { %v291_v21 = vpack.c.bf16 %v255_v20, %v252_v17  ;;  %v284_v34 = vadd.f32 %v255_v20, %v174_v1 }
  0xfc   : > { %512 = vmatprep.subr.bf16.mxu1 %v291_v21 }
  0xfd   : > { %513 = vmatpush3.bf16.msra.mxu1 %v291_v21 }
  0xfe   : > { %v510_v22 = vpop.f32.mrb[4].mxu0  ;;  %514 = vmatprep.subr.bf16.mxu1 %v292_v19 }
  0xff   : > { %v268_v23 = vpop.f32.mrb[5].mxu0  ;;  %v289_v44 = vadd.f32 %v510_v22, %v179_v10 }
 0x100   : > { %v511_v24 = vpop.f32.mrb[6].mxu0  ;;  %v287_v45 = vadd.f32 %v268_v23, %v583_v6 }
 0x101   : > { %v294_v25 = vpack.c.bf16 %v511_v24, %v510_v22  ;;  %v271_v26 = vpop.f32.mrb[7].mxu0  ;;  %515 = vmatpush3.bf16.msra.mxu1 %v292_v19  ;;  %v290_v47 = vadd.f32 %v511_v24, %v180_v11 }
 0x102   : > { %v293_v27 = vpack.c.bf16 %v271_v26, %v268_v23  ;;  %v288_v50 = vadd.f32 %v271_v26, %v585_v7 }
 0x104   : > { %516 = vmatprep.subr.bf16.mxu1 %v293_v27 }
 0x105   : > { %517 = vmatpush3.bf16.msra.mxu1 %v293_v27 }
 0x106   : > { %518 = vmatprep.subr.bf16.mxu1 %v294_v25 }
 0x109   : > { %519 = vmatpush3.bf16.msra.mxu1 %v294_v25 }
 0x10c   : > { %521 = vmatmul.mubr.msk.bf16.vlgmr.msra.gmra.mrb[0].mxu1 %vm205_vm0, %v537_v13 }
 0x10d   : > { %524 = vmatprep.mubr.msk.bf16.mxu1 %vm205_vm0, %v538_v14 }
 0x114   : > { %525 = vmatmul.mubr.msk.bf16.gmra.mrb[4].mxu1 %vm205_vm0, %v539_v15 }
 0x1df   : > { %v522_v30 = vpop.f32.mrb[0].mxu1 }
 0x1e0   : > { %v362_v32 = vadd.f32 %v522_v30, %v285_v28  ;;  %v329_v33 = vpop.f32.mrb[1].mxu1 }
 0x1e1   : > { %v360_v35 = vadd.f32 %v329_v33, %v283_v29  ;;  %v523_v36 = vpop.f32.mrb[2].mxu1 }
 0x1e2   : > { %v370_v37 = vmul.f32 0.33333334, %v362_v32  ;;  %v363_v38 = vadd.f32 %v523_v36, %v286_v31  ;;  %v332_v39 = vpop.f32.mrb[3].mxu1 }
 0x1e3   : > { %v368_v40 = vmul.f32 0.33333334, %v360_v35  ;;  %v361_v41 = vadd.f32 %v332_v39, %v284_v34 }
 0x1e4   : > { %379 = vst.msk [vmem:[%s602_s21 + $0x10] sm:$0xff] %vm376_vm1, %v370_v37  ;;  %v371_v42 = vmul.f32 0.33333334, %v363_v38 }
 0x1e5   : > { %377 = vst.msk [vmem:[%s602_s21] sm:$0xff] %vm376_vm1, %v368_v40  ;;  %v369_v43 = vmul.f32 0.33333334, %v361_v41 }
 0x1e6   : > { %380 = vst.msk [vmem:[%s602_s21 + $0x18] sm:$0xff] %vm376_vm1, %v371_v42 }
 0x1e7   : > { %378 = vst.msk [vmem:[%s602_s21 + $0x8] sm:$0xff] %vm376_vm1, %v369_v43  ;;  %v526_v46 = vpop.f32.mrb[4].mxu1 }
 0x1e8   : > { %v366_v48 = vadd.f32 %v526_v46, %v289_v44  ;;  %v345_v49 = vpop.f32.mrb[5].mxu1 }
 0x1e9   : > { %v364_v51 = vadd.f32 %v345_v49, %v287_v45  ;;  %v527_v52 = vpop.f32.mrb[6].mxu1 }
 0x1ea   : > { %v374_v53 = vmul.f32 0.33333334, %v366_v48  ;;  %v367_v54 = vadd.f32 %v527_v52, %v290_v47  ;;  %v348_v55 = vpop.f32.mrb[7].mxu1 }
 0x1eb   : > { %v372_v56 = vmul.f32 0.33333334, %v364_v51  ;;  %v365_v57 = vadd.f32 %v348_v55, %v288_v50 }
 0x1ec   : > { %383 = vst.msk [vmem:[%s602_s21 + $0x30] sm:$0xff] %vm376_vm1, %v374_v53  ;;  %v375_v58 = vmul.f32 0.33333334, %v367_v54 }
 0x1ed   : > { %381 = vst.msk [vmem:[%s602_s21 + $0x20] sm:$0xff] %vm376_vm1, %v372_v56  ;;  %v373_v59 = vmul.f32 0.33333334, %v365_v57 }
 0x1ee   : > { %384 = vst.msk [vmem:[%s602_s21 + $0x38] sm:$0xff] %vm376_vm1, %v375_v58 }
 0x1ef   : > { %382 = vst.msk [vmem:[%s602_s21 + $0x28] sm:$0xff] %vm376_vm1, %v373_v59 }
 0x1f0 PF: > { %s12_s9 = sadd.s32 1, %s546_s9  }
 0x1f1   : > { %p9_p4 = scmp.ge.s32.totalorder %s12_s9, 5  }
 0x1f3   :  { %11 = sbr.rel (!%p9_p4) target bundleno = 1 (0x1), region = 61 }

// kernel: copd_forward.3
= control target key start
LH: loop header
LB: loop body
LE: loop exit
PB: predicated region body
PF: predicated region fallthrough
CT: control target
= control target key end

     0   :  { %v2652_v0 = vmov 0.0|0.0   ;;  %vm2653_vm0 = vmmov 0   ;;  %v2654_v4 = vmov 0.0   ;;  %vm36_vm1 = vcmask 261120   ;;  %s2660_s16 = smov 1   ;;  %s2661_s17 = smov 3   ;;  %s3324_s3 = inlined_call_operand.vmem [shape: f32[576,128], index: 3, kind: input, shape index: {}]   ;;  %s3325_s0 = inlined_call_operand.vmem [shape: f32[88,32], index: 0, kind: input, shape index: {}]   ;;  %s3326_s4 = inlined_call_operand.vmem [shape: f32[8,1280], index: 4, kind: input, shape index: {}]   ;;  %s3327_s1 = inlined_call_operand.vmem [shape: f32[32,24], index: 1, kind: input, shape index: {}]   ;;  %s3328_s5 = inlined_call_operand.vmem [shape: f32[8,22], index: 5, kind: output, shape index: {}]   ;;  %s3329_s2 = inlined_call_operand.vmem [shape: f32[32,20], index: 2, kind: input, shape index: {}]  }
   0x1   :  { %2428 = vmatprep.subr.bf16.mxu0 %v2652_v0  ;;  %v31_v1 = vld [vmem:[%s3324_s3] sm:$0xff]  ;;  %v32_v2 = vld [vmem:[%s3324_s3 + $0x8] sm:$0xff]  ;;  %v33_v3 = vld [vmem:[%s3324_s3 + $0x10] sm:$0xff]  ;;  %2181 = vmatprep.mubr.msk.f32.mxu0 %vm2653_vm0, %v2654_v4  ;;  %vm120_vm2 = vcmask 523264   ;;  %vm1888_vm3 = vcmask 7168   ;;  %vm692_vm4 = vcmask 23552  }
   0x2   :  { %v2429_v5 = vpack.c.bf16 %v32_v2, %v31_v1  ;;  %v34_v6 = vld [vmem:[%s3324_s3 + $0x18] sm:$0xff]  ;;  %2434 = vmatprep.subr.bf16.mxu1 %v2652_v0  ;;  %v111_v7 = vld [vmem:[%s3324_s3 + $0x20] sm:$0xff]  ;;  %2200 = vmatprep.mubr.msk.f32.mxu1 %vm2653_vm0, %v2654_v4  ;;  %v112_v8 = vld [vmem:[%s3324_s3 + $0x28] sm:$0xff]  ;;  %vm1588_vm5 = vcmask 162816   ;;  %vm1563_vm6 = vcmask 195584   ;;  %s2662_s18 = smov 16  }
   0x3   :  { %v113_v9 = vld [vmem:[%s3324_s3 + $0x30] sm:$0xff]  ;;  %v114_v10 = vld [vmem:[%s3324_s3 + $0x38] sm:$0xff]  ;;  %v2432_v11 = vpack.c.bf16 %v34_v6, %v33_v3  ;;  %v2435_v12 = vpack.c.bf16 %v112_v8, %v111_v7  ;;  %v115_v14 = vld [vmem:[%s3324_s3 + $0x40] sm:$0xff]  ;;  %s2663_s19 = smov 9   ;;  %s2664_s20 = smov 8   ;;  %vm1894_vm7 = vcmask 15368  }
   0x4   :  { %2430 = vmatpush3.bf16.msra.mxu0 %v2429_v5  ;;  %v2438_v13 = vpack.c.bf16 %v114_v10, %v113_v9  ;;  %v116_v15 = vld [vmem:[%s3324_s3 + $0x48] sm:$0xff]  ;;  %v2744_v16 = vld [vmem:[%s3325_s0 + $0x10] sm:$0xff]  ;;  %v118_v19 = vld [vmem:[%s3324_s3 + $0x58] sm:$0xff]  ;;  %vm1900_vm8 = vcmask 23568   ;;  %s2665_s23 = smov 11   ;;  %s2666_s25 = smov 10  }
   0x5   :  { %2431 = vmatprep.subr.bf16.mxu0 %v2652_v0  ;;  %2436 = vmatpush3.bf16.msra.mxu1 %v2435_v12  ;;  %v2441_v17 = vpack.c.bf16 %v116_v15, %v115_v14  ;;  %v117_v18 = vld [vmem:[%s3324_s3 + $0x50] sm:$0xff]  ;;  %v35_v21 = vld [vmem:[%s3326_s4] ss:$0 sm:$0xff]  ;;  %v195_v23 = vld [vmem:[%s3324_s3 + $0x68] sm:$0xff]  ;;  %vm1906_vm9 = vcmask 31768   ;;  %vm1908_vm10 = vcmask 39968  }
   0x6   :  { %2437 = vmatprep.subr.bf16.mxu1 %v2652_v0  ;;  %v2444_v20 = vpack.c.bf16 %v118_v19, %v117_v18  ;;  %v194_v22 = vld [vmem:[%s3324_s3 + $0x60] sm:$0xff]  ;;  %v196_v29 = vld [vmem:[%s3324_s3 + $0x70] sm:$0xff]  ;;  %v197_v30 = vld [vmem:[%s3324_s3 + $0x78] sm:$0xff]  ;;  %vm1910_vm11 = vcmask 48168   ;;  %vm1912_vm12 = vcmask 56368   ;;  %vm1914_vm13 = vcmask 64568  }
   0x7   :  { %v2447_v27 = vpack.c.bf16 %v195_v23, %v194_v22  ;;  %v2450_v31 = vpack.c.bf16 %v197_v30, %v196_v29  ;;  %v198_v32 = vld [vmem:[%s3324_s3 + $0x80] sm:$0xff]  ;;  %v199_v33 = vld [vmem:[%s3324_s3 + $0x88] sm:$0xff]  ;;  %v200_v35 = vld [vmem:[%s3324_s3 + $0x90] sm:$0xff]  ;;  %vm1920_vm14 = vcmask 72768   ;;  %vm1926_vm15 = vcmask 80968   ;;  %s2667_s12 = smov 13  }
   0x8   :  { %2433 = vmatpush3.bf16.msra.mxu0 %v2432_v11  ;;  %v2453_v34 = vpack.c.bf16 %v199_v33, %v198_v32  ;;  %v201_v36 = vld [vmem:[%s3324_s3 + $0x98] sm:$0xff]  ;;  %v273_v38 = vld [vmem:[%s3324_s3 + $0xa0] sm:$0xff]  ;;  %v274_v39 = vld [vmem:[%s3324_s3 + $0xa8] sm:$0xff]  ;;  %s2668_s13 = smov 12   ;;  %s2669_s14 = smov 15  }
   0x9   :  { %2464 = vmatprep.subr.bf16.mxu0 %v2652_v0  ;;  %2439 = vmatpush3.bf16.msra.mxu1 %v2438_v13  ;;  %v2456_v37 = vpack.c.bf16 %v201_v36, %v200_v35  ;;  %v2459_v40 = vpack.c.bf16 %v274_v39, %v273_v38  ;;  %v275_v41 = vld [vmem:[%s3324_s3 + $0xb0] sm:$0xff]  ;;  %v276_v42 = vld [vmem:[%s3324_s3 + $0xb8] sm:$0xff]  ;;  %v386_v44 = vld [vmem:[%s3324_s3 + $0xe0] sm:$0xff]  ;;  %s2670_s15 = smov 14  }
   0xa   :  { %2440 = vmatprep.subr.bf16.mxu1 %v2652_v0  ;;  %v2462_v43 = vpack.c.bf16 %v276_v42, %v275_v41  ;;  %v387_v45 = vld [vmem:[%s3324_s3 + $0xe8] sm:$0xff]  ;;  %v382_v47 = vld [vmem:[%s3324_s3 + $0xc0] sm:$0xff]  ;;  %v388_v49 = vld [vmem:[%s3324_s3 + $0xf0] sm:$0xff] }
   0xb   :  { %2182 = vmatmul.mubr.msk.f32.vlgmr.msra.gmra.mrb[0].mxu0 %vm36_vm1, %v2744_v16  ;;  %v2465_v46 = vpack.c.bf16 %v387_v45, %v386_v44  ;;  %v383_v48 = vld [vmem:[%s3324_s3 + $0xc8] sm:$0xff]  ;;  %v2828_v50 = vld [vmem:[%s3325_s0] sm:$0xff]  ;;  %v389_v52 = vld [vmem:[%s3324_s3 + $0xf8] sm:$0xff]  ;;  %v2655_v44 = vmov 1.0|1.0  }
   0xc   :  { %2247 = vmatprep.mubr.msk.f32.mxu0 %vm2653_vm0, %v2654_v4  ;;  %v2471_v51 = vpack.c.bf16 %v383_v48, %v382_v47  ;;  %v2468_v53 = vpack.c.bf16 %v389_v52, %v388_v49  ;;  %v2842_v54 = vld [vmem:[%s3325_s0 + $0x8] sm:$0xff]  ;;  %v384_v55 = vld [vmem:[%s3324_s3 + $0xd0] sm:$0xff]  ;;  %v385_v56 = vld [vmem:[%s3324_s3 + $0xd8] sm:$0xff] }
   0xd   :  { %2442 = vmatpush3.bf16.msra.mxu1 %v2441_v17  ;;  %2466 = vmatpush3.bf16.msra.mxu0 %v2465_v46  ;;  %v2474_v57 = vpack.c.bf16 %v385_v56, %v384_v55  ;;  %v533_v60 = vld [vmem:[%s3324_s3 + $0x100] sm:$0xff]  ;;  %v534_v61 = vld [vmem:[%s3324_s3 + $0x108] sm:$0xff]  ;;  %v202_v62 = vld [vmem:[%s3326_s4 + $0x10] ss:$0 sm:$0xff] }
   0xe   :  { %2443 = vmatprep.subr.bf16.mxu1 %v2652_v0  ;;  %2467 = vmatprep.subr.bf16.mxu0 %v2652_v0  ;;  %v2477_v1 = vpack.c.bf16 %v534_v61, %v533_v60  ;;  %v535_v5 = vld [vmem:[%s3324_s3 + $0x110] sm:$0xff]  ;;  %v536_v6 = vld [vmem:[%s3324_s3 + $0x118] sm:$0xff]  ;;  %v726_v8 = vld [vmem:[%s3324_s3 + $0x160] sm:$0xff] }
   0xf   :  { %v2480_v7 = vpack.c.bf16 %v536_v6, %v535_v5  ;;  %v727_v9 = vld [vmem:[%s3324_s3 + $0x168] sm:$0xff]  ;;  %v728_v13 = vld [vmem:[%s3324_s3 + $0x170] sm:$0xff]  ;;  %v729_v14 = vld [vmem:[%s3324_s3 + $0x178] sm:$0xff] }
  0x10   :  { %v119_v10 = vld [vmem:[%s3326_s4 + $0x8] ss:$0 sm:$0xff]  ;;  %v2489_v11 = vpack.c.bf16 %v727_v9, %v726_v8  ;;  %v2492_v15 = vpack.c.bf16 %v729_v14, %v728_v13  ;;  %v872_v19 = vld [vmem:[%s3324_s3 + $0x190] sm:$0xff]  ;;  %v2951_v30 = vld [vmem:[%s3325_s0 + $0x38] sm:$0xff] }
  0x11   :  { %2445 = vmatpush3.bf16.msra.mxu1 %v2444_v20  ;;  %2469 = vmatpush3.bf16.msra.mxu0 %v2468_v53  ;;  %v871_v17 = vld [vmem:[%s3324_s3 + $0x188] sm:$0xff]  ;;  %v873_v20 = vld [vmem:[%s3324_s3 + $0x198] sm:$0xff]  ;;  %v1057_v32 = vld [vmem:[%s3324_s3 + $0x1d0] sm:$0xff] }
  0x12   :  { %2446 = vmatprep.subr.bf16.mxu1 %v2652_v0  ;;  %2476 = vmatprep.subr.bf16.mxu0 %v2652_v0  ;;  %v1060_v22 = vld [vmem:[%s3324_s3 + $0x1e8] sm:$0xff]  ;;  %v2504_v23 = vpack.c.bf16 %v873_v20, %v872_v19  ;;  %v1058_v33 = vld [vmem:[%s3324_s3 + $0x1d8] sm:$0xff]  ;;  %v2987_v42 = vld [vmem:[%s3325_s0 + $0x20] sm:$0xff] }
  0x13   :  { %v1056_v29 = vld [vmem:[%s3324_s3 + $0x1c8] sm:$0xff]  ;;  %v2524_v35 = vpack.c.bf16 %v1058_v33, %v1057_v32  ;;  %v2967_v36 = vld [vmem:[%s3325_s0 + $0x18] sm:$0xff]  ;;  %v616_v5 = vld [vmem:[%s3324_s3 + $0x130] sm:$0xff] }
  0x14   :  { %v1402_v38 = vld [vmem:[%s3327_s1 + $0x8] sm:$0xff]  ;;  %v1404_v41 = vld [vmem:[%s3327_s1 + $0x18] sm:$0xff]  ;;  %v611_v13 = vld [vmem:[%s3326_s4 + $0x20] ss:$0 sm:$0xff] }
  0x15   :  { %v3001_v46 = vld [vmem:[%s3325_s0 + $0x48] sm:$0xff]  ;;  %v3017_v53 = vld [vmem:[%s3326_s4 + $0x18] ss:$0 sm:$0xff] }
  0x16   :  { %v617_v6 = vld [vmem:[%s3324_s3 + $0x138] sm:$0xff] }
  0xde   :  { %v106_v24 = vpop.f32.mrb[0].mxu0 }
  0xdf   :  { %v107_v25 = vadd.f32 %v106_v24, %v35_v21  ;;  %v2183_v26 = vpop.f32.mrb[1].mxu0  ;;  %v1059_v21 = vld [vmem:[%s3324_s3 + $0x1e0] sm:$0xff] }
  0xe0   :  { %v2512_v24 = vpack.c.bf16 %v1060_v22, %v1059_v21  ;;  %v1062_v26 = vld [vmem:[%s3324_s3 + $0x1f8] sm:$0xff]  ;;  %v724_v21 = vld [vmem:[%s3324_s3 + $0x150] sm:$0xff] }
  0xe1   :  { %v110_v28 = vmax.f32 %v107_v25, 0.0  ;;  %v1061_v25 = vld [vmem:[%s3324_s3 + $0x1f0] sm:$0xff]  ;;  %v725_v22 = vld [vmem:[%s3324_s3 + $0x158] sm:$0xff] }
  0xe3   :  { %2201 = vmatmul.mubr.msk.f32.vlgmr.msra.gmra.mrb[0].mxu1 %vm120_vm2, %v110_v28 }
  0xe4   :  { %2448 = vmatpush3.bf16.msra.mxu1 %v2447_v27  ;;  %2219 = vmatprep.mubr.msk.f32.mxu1 %vm2653_vm0, %v2654_v4  ;;  %v2516_v27 = vpack.c.bf16 %v1062_v26, %v1061_v25 }
  0xe5   :  { %2449 = vmatprep.subr.bf16.mxu1 %v2652_v0 }
  0xe8   :  { %2451 = vmatpush3.bf16.msra.mxu1 %v2450_v31 }
  0xe9   :  { %2452 = vmatprep.subr.bf16.mxu1 %v2652_v0 }
  0xec   :  { %2454 = vmatpush3.bf16.msra.mxu1 %v2453_v34  ;;  %v28_v34 = vld [vmem:[%s3325_s0 + $0x40] sm:$0xff] }
  0xed   :  { %2455 = vmatprep.subr.bf16.mxu1 %v2652_v0 }
  0xf0   :  { %2457 = vmatpush3.bf16.msra.mxu1 %v2456_v37  ;;  %v1401_v37 = vld [vmem:[%s3327_s1] sm:$0xff] }
  0xf1   :  { %2458 = vmatprep.subr.bf16.mxu1 %v2652_v0  ;;  %v2544_v39 = vpack.c.bf16 %v1402_v38, %v1401_v37  ;;  %v948_v37 = vld [vmem:[%s3324_s3 + $0x1a0] sm:$0xff]  ;;  %v949_v38 = vld [vmem:[%s3324_s3 + $0x1a8] sm:$0xff] }
  0xf3   :  { %2220 = vmatmul.mubr.msk.f32.vlgmr.msra.gmra.mrb[2].mxu1 %vm120_vm2, %v110_v28  ;;  %v1055_v28 = vld [vmem:[%s3324_s3 + $0x1c0] sm:$0xff] }
  0xf4   :  { %2460 = vmatpush3.bf16.msra.mxu1 %v2459_v40  ;;  %2230 = vmatprep.mubr.msk.f32.mxu1 %vm2653_vm0, %v2654_v4  ;;  %v2520_v31 = vpack.c.bf16 %v1056_v29, %v1055_v28  ;;  %v1403_v40 = vld [vmem:[%s3327_s1 + $0x10] sm:$0xff] }
  0xf5   :  { %2461 = vmatprep.subr.bf16.mxu1 %v2652_v0 }
  0xf8   :  { %2463 = vmatpush3.bf16.msra.mxu1 %v2462_v43  ;;  %v2548_v43 = vpack.c.bf16 %v1404_v41, %v1403_v40  ;;  %v950_v40 = vld [vmem:[%s3324_s3 + $0x1b0] sm:$0xff]  ;;  %v951_v41 = vld [vmem:[%s3324_s3 + $0x1b8] sm:$0xff] }
  0xf9   :  { %2470 = vmatprep.subr.bf16.mxu1 %v2652_v0 }
  0xfb   :  { %2231 = vmatmul.mubr.msk.f32.vlgmr.msra.gmra.mrb[4].mxu1 %vm36_vm1, %v2828_v50 }
  0xfc   :  { %2233 = vmatprep.mubr.msk.f32.mxu1 %vm2653_vm0, %v2654_v4  ;;  %2472 = vmatpush3.bf16.msra.mxu1 %v2471_v51 }
  0xfd   :  { %2473 = vmatprep.subr.bf16.mxu1 %v2652_v0 }
  0xff   :  { %2234 = vmatmul.mubr.msk.f32.gmra.mrb[6].mxu1 %vm36_vm1, %v2842_v54 }
 0x100   :  { %2236 = vmatprep.mubr.msk.f32.mxu1 %vm2653_vm0, %v2654_v4  ;;  %2475 = vmatpush3.bf16.msra.mxu1 %v2474_v57 }
 0x101   :  { %2482 = vmatprep.subr.bf16.mxu1 %v2652_v0 }
 0x103   :  { %2237 = vmatmul.mubr.msk.f32.gmra.mrb[8].mxu1 %vm36_vm1, %v2744_v16  ;;  %v870_v16 = vld [vmem:[%s3324_s3 + $0x180] sm:$0xff] }
 0x104   :  { %2258 = vmatprep.mubr.msk.f32.mxu1 %vm2653_vm0, %v2654_v4  ;;  %v2501_v18 = vpack.c.bf16 %v871_v17, %v870_v16  ;;  %v722_v16 = vld [vmem:[%s3324_s3 + $0x140] sm:$0xff]  ;;  %v723_v17 = vld [vmem:[%s3324_s3 + $0x148] sm:$0xff] }
 0x105   :  { %v2495_v19 = vpack.c.bf16 %v723_v17, %v722_v16  ;;  %v1482_v16 = vld [vmem:[%s3329_s2] sm:$0xff]  ;;  %v1483_v17 = vld [vmem:[%s3329_s2 + $0x8] sm:$0xff] }
 0x107   :  { %2259 = vmatmul.mubr.msk.f32.vlgmr.msra.gmra.mrb[10].mxu1 %vm36_vm1, %v2828_v50 }
 0x108   :  { %2280 = vmatprep.mubr.msk.f32.mxu1 %vm2653_vm0, %v2654_v4 }
 0x1b6   :  { %v190_v58 = vpop.f32.mrb[0].mxu1 }
 0x1b7   :  { %v2202_v59 = vpop.f32.mrb[1].mxu1  ;;  %v2896_v12 = vadd.f32 %v190_v58, %v119_v10 }
 0x1b9   :  { %v1615_v48 = vmul.f32 %v2896_v12, %v2951_v30  ;;  %v1616_v49 = vmul.f32 %v2896_v12, %v3001_v46 }
 0x1c6   :  { %v269_v63 = vpop.f32.mrb[2].mxu1 }
 0x1c7   :  { %v2874_v2 = vadd.f32 %v269_v63, %v202_v62  ;;  %v2221_v3 = vpop.f32.mrb[3].mxu1  ;;  %v614_v63 = vld [vmem:[%s3324_s3 + $0x120] sm:$0xff] }
 0x1c9   :  { %2248 = vmatmul.mubr.msk.f32.vlgmr.msra.gmra.mrb[2].mxu0 %vm36_vm1, %v2874_v2  ;;  %v1613_v45 = vmul.f32 %v2874_v2, %v2951_v30  ;;  %v1614_v47 = vmul.f32 %v2874_v2, %v3001_v46 }
 0x1ca   :  { %2478 = vmatpush3.bf16.msra.mxu0 %v2477_v1  ;;  %2269 = vmatprep.mubr.msk.f32.mxu0 %vm2653_vm0, %v2654_v4  ;;  %v615_v1 = vld [vmem:[%s3324_s3 + $0x128] sm:$0xff] }
 0x1cb   :  { %2479 = vmatprep.subr.bf16.mxu0 %v2652_v0  ;;  %v2483_v3 = vpack.c.bf16 %v615_v1, %v614_v63  ;;  %v1234_v63 = vld [vmem:[%s3324_s3 + $0x230] sm:$0xff]  ;;  %v1235_v1 = vld [vmem:[%s3324_s3 + $0x238] sm:$0xff] }
 0x1cd   :  { %2484 = vmatpush3.bf16.msra.mxu1 %v2483_v3 }
 0x1ce   :  { %2481 = vmatpush3.bf16.msra.mxu0 %v2480_v7  ;;  %v3012_v51 = vpop.f32.mrb[4].mxu1  ;;  %2485 = vmatprep.subr.bf16.mxu1 %v2652_v0  ;;  %v2486_v7 = vpack.c.bf16 %v617_v6, %v616_v5  ;;  %v2532_v6 = vpack.c.bf16 %v1235_v1, %v1234_v63 }
 0x1cf   :  { %2488 = vmatprep.subr.bf16.mxu0 %v2652_v0  ;;  %v2232_v52 = vpop.f32.mrb[5].mxu1 }
 0x1d1   :  { %2270 = vmatmul.mubr.msk.f32.vlgmr.msra.gmra.mrb[4].mxu0 %vm36_vm1, %v2896_v12  ;;  %2487 = vmatpush3.bf16.msra.mxu1 %v2486_v7  ;;  %v1228_v7 = vld [vmem:[%s3324_s3 + $0x200] sm:$0xff] }
 0x1d2   :  { %2490 = vmatpush3.bf16.msra.mxu0 %v2489_v11  ;;  %2291 = vmatprep.mubr.msk.f32.mxu0 %vm2653_vm0, %v2654_v4  ;;  %v355_v55 = vpop.f32.mrb[6].mxu1 }
 0x1d3   :  { %2491 = vmatprep.subr.bf16.mxu0 %v2652_v0  ;;  %v3020_v56 = vadd.f32 %v355_v55, %v3017_v53  ;;  %v2235_v57 = vpop.f32.mrb[7].mxu1  ;;  %2494 = vmatprep.subr.bf16.mxu1 %v2652_v0 }
 0x1d6   :  { %2493 = vmatpush3.bf16.msra.mxu0 %v2492_v15  ;;  %v360_v58 = vpop.f32.mrb[8].mxu1 }
 0x1d7   :  { %2500 = vmatprep.subr.bf16.mxu0 %v2652_v0  ;;  %v3023_v59 = vadd.f32 %v360_v58, %v3017_v53  ;;  %v2238_v60 = vpop.f32.mrb[9].mxu1 }
 0x1d9   :  { %2292 = vmatmul.mubr.msk.f32.vlgmr.msra.gmra.mrb[6].mxu0 %vm36_vm1, %v2874_v2 }
 0x1da   :  { %2502 = vmatpush3.bf16.msra.mxu0 %v2501_v18  ;;  %2313 = vmatprep.mubr.msk.f32.mxu0 %vm2653_vm0, %v2654_v4  ;;  %v529_v61 = vpop.f32.mrb[10].mxu1 }
 0x1db   :  { %2503 = vmatprep.subr.bf16.mxu0 %v2652_v0  ;;  %v2260_v62 = vpop.f32.mrb[11].mxu1 }
 0x1de   :  { %2505 = vmatpush3.bf16.msra.mxu0 %v2504_v23 }
 0x1df   :  { %2513 = vmatprep.subr.bf16.mxu0 %v2512_v24 }
 0x1e1   :  { %2314 = vmatmul.mubr.msk.f32.vlgmr.msra.gmra.mrb[8].mxu0 %vm36_vm1, %v2896_v12 }
 0x1e2   :  { %2515 = vmatpush3.bf16.msra.mxu0 %v2512_v24  ;;  %2335 = vmatprep.mubr.msk.f32.mxu0 %vm36_vm1, %v2951_v30  ;;  %v2498_v24 = vpack.c.bf16 %v725_v22, %v724_v21  ;;  %v3153_v21 = vld [vmem:[%s3325_s0 + $0x30] sm:$0xff] }
 0x1e3   :  { %2517 = vmatprep.subr.bf16.mxu0 %v2516_v27 }
 0x1e6   :  { %2519 = vmatpush3.bf16.msra.mxu0 %v2516_v27 }
 0x1e7   :  { %2521 = vmatprep.subr.bf16.mxu0 %v2520_v31 }
 0x1e9   :  { %2336 = vmatmul.mubr.msk.f32.vlgmr.msra.gmra.mrb[10].mxu0 %vm36_vm1, %v28_v34 }
 0x1ea   :  { %2523 = vmatpush3.bf16.msra.mxu0 %v2520_v31  ;;  %2346 = vmatprep.mubr.msk.f32.mxu0 %vm36_vm1, %v2967_v36 }
 0x1eb   :  { %2525 = vmatprep.subr.bf16.mxu0 %v2524_v35 }
 0x1ee   :  { %2527 = vmatpush3.bf16.msra.mxu0 %v2524_v35 }
 0x1ef   :  { %2545 = vmatprep.subr.bf16.mxu0 %v2544_v39 }
 0x1f1   :  { %2347 = vmatmul.mubr.msk.f32.vlgmr.msra.gmra.mrb[10].mxu0 %vm36_vm1, %v2987_v42 }
 0x1f2   :  { %2547 = vmatpush3.bf16.msra.mxu0 %v2544_v39  ;;  %2379 = vmatprep.mubr.msk.f32.mxu0 %vm36_vm1, %v2896_v12  ;;  %v2507_v39 = vpack.c.bf16 %v949_v38, %v948_v37  ;;  %v952_v37 = vld [vmem:[%s3326_s4 + $0x38] ss:$0 sm:$0xff] }
 0x1f3   :  { %2549 = vmatprep.subr.bf16.mxu0 %v2548_v43 }
 0x1f6   :  { %2551 = vmatpush3.bf16.msra.mxu0 %v2548_v43  ;;  %v2510_v43 = vpack.c.bf16 %v951_v41, %v950_v40 }
 0x1f7   :  { %2560 = vmatprep.subr.bf16.mxu0 %v2655_v44 }
 0x1f9   :  { %2380 = vmatmul.mubr.msk.f32.vlgmr.msra.gmra.mrb[12].mxu0 %vm36_vm1, %v2874_v2 }
 0x1fa   :  { %2561 = vmatpush3.bf16.msra.mxu0 %v2655_v44  ;;  %2401 = vmatprep.mubr.msk.f32.mxu0 %vm36_vm1, %v1613_v45  ;;  %v1233_v45 = vld [vmem:[%s3324_s3 + $0x228] sm:$0xff] }
 0x1fb   :  { %2562 = vmatprep.subr.bf16.mxu0 %v2655_v44 }
 0x1fe   :  { %2563 = vmatpush3.bf16.msra.mxu0 %v2655_v44  ;;  %v1232_v44 = vld [vmem:[%s3324_s3 + $0x220] sm:$0xff] }
 0x201   :  { %2402 = vmatmul.mubr.msk.f32.vlgmr.msra.gmra.mrb[14].mxu0 %vm36_vm1, %v1614_v47  ;;  %v2528_v47 = vpack.c.bf16 %v1233_v45, %v1232_v44 }
 0x202   :  { %2404 = vmatprep.mubr.msk.f32.mxu0 %vm36_vm1, %v1615_v48 }
 0x205   :  { %2405 = vmatmul.mubr.msk.f32.gmra.mrb[16].mxu0 %vm36_vm1, %v1616_v49 }
 0x29c   :  { %v459_v8 = vpop.f32.mrb[2].mxu0 }
 0x29d   :  { %v530_v9 = vadd.f32 %v529_v61, %v459_v8  ;;  %v2249_v10 = vpop.f32.mrb[3].mxu0  ;;  %v945_v61 = vld [vmem:[%s3326_s4 + $0x30] ss:$0 sm:$0xff]  ;;  %v1229_v8 = vld [vmem:[%s3324_s3 + $0x208] sm:$0xff] }
 0x29e   :  { %v1230_v10 = vld [vmem:[%s3324_s3 + $0x210] sm:$0xff] }
 0x2a4   :  { %v606_v11 = vpop.f32.mrb[4].mxu0 }
 0x2a5   :  { %v610_v14 = vadd.f32 %v606_v11, %v530_v9  ;;  %v2271_v15 = vpop.f32.mrb[5].mxu0  ;;  %v2536_v9 = vpack.c.bf16 %v1229_v8, %v1228_v7  ;;  %v1231_v11 = vld [vmem:[%s3324_s3 + $0x218] sm:$0xff]  ;;  %v1225_v8 = vld [vmem:[%s3326_s4 + $0x40] ss:$0 sm:$0xff] }
 0x2a6   :  { %v3133_v15 = vld [vmem:[%s3325_s0 + $0x28] sm:$0xff] }
 0x2a7   :  { %v612_v18 = vadd.f32 %v611_v13, %v610_v14  ;;  %v30_v13 = vld [vmem:[%s3325_s0 + $0x50] sm:$0xff]  ;;  %v2540_v14 = vpack.c.bf16 %v1231_v11, %v1230_v10 }
 0x2a9   :  { %v613_v20 = vmax.f32 %v612_v18, 0.0  ;;  %v2552_v18 = vpack.c.bf16 %v1483_v17, %v1482_v16 }
 0x2ab   :  { %2281 = vmatmul.mubr.msk.f32.vlgmr.msra.gmra.mrb[12].mxu1 %vm36_vm1, %v613_v20  ;;  %v1485_v20 = vld [vmem:[%s3329_s2 + $0x18] sm:$0xff] }
 0x2ac   :  { %2496 = vmatpush3.bf16.msra.mxu1 %v2495_v19  ;;  %v796_v23 = vpop.f32.mrb[6].mxu0  ;;  %2302 = vmatprep.mubr.msk.f32.mxu1 %vm2653_vm0, %v2654_v4  ;;  %v1484_v19 = vld [vmem:[%s3329_s2 + $0x10] sm:$0xff] }
 0x2ad   :  { %v2293_v25 = vpop.f32.mrb[7].mxu0  ;;  %2497 = vmatprep.subr.bf16.mxu1 %v2652_v0  ;;  %v2556_v22 = vpack.c.bf16 %v1485_v20, %v1484_v19 }
 0x2b0   :  { %2499 = vmatpush3.bf16.msra.mxu1 %v2498_v24 }
 0x2b1   :  { %2506 = vmatprep.subr.bf16.mxu1 %v2652_v0 }
 0x2b3   :  { %2303 = vmatmul.mubr.msk.f32.vlgmr.msra.gmra.mrb[14].mxu1 %vm36_vm1, %v2842_v54 }
 0x2b4   :  { %v940_v26 = vpop.f32.mrb[8].mxu0  ;;  %2324 = vmatprep.mubr.msk.f32.mxu1 %vm2653_vm0, %v2654_v4  ;;  %2508 = vmatpush3.bf16.msra.mxu1 %v2507_v39 }
 0x2b5   :  { %v2315_v27 = vpop.f32.mrb[9].mxu0  ;;  %2509 = vmatprep.subr.bf16.mxu1 %v2652_v0  ;;  %v618_v0 = vld [vmem:[%s3326_s4 + $0x28] ss:$0 sm:$0xff] }
 0x2b8   :  { %2511 = vmatpush3.bf16.msra.mxu1 %v2510_v43 }
 0x2b9   :  { %2529 = vmatprep.subr.bf16.mxu1 %v2528_v47 }
 0x2c4   :  { %v3063_v28 = vpop.f32.mrb[10].mxu0 }
 0x2c5   :  { %v3065_v29 = vpop.f32.mrb[11].mxu0  ;;  %v1227_v11 = vadd.f32 %v3063_v28, %v1225_v8 }
 0x2cc   :  { %v3067_v31 = vpop.f32.mrb[12].mxu0 }
 0x2cd   :  { %v3069_v32 = vpop.f32.mrb[13].mxu0 }
 0x2d4   :  { %v3071_v33 = vpop.f32.mrb[14].mxu0 }
 0x2d5   :  { %v1751_v34 = vpop.f32.mrb[15].mxu0 }
 0x2d6   :  { %1889 = vst.msk [vmem:[%s3328_s5] sm:$0xff] %vm1888_vm3, %v1751_v34  ;;  %v2656_v34 = vmov 0  }
 0x2d7   :  { %2589 = vset.pattern.permute.xlu0 %v2656_v34 }
 0x2d8   :  { %v3076_v35 = vpop.f32.mrb[16].mxu0 }
 0x2d9   :  { %v3078_v4 = vpop.f32.mrb[17].mxu0 }
 0x37e   :  { %v688_v48 = vpop.f32.mrb[12].mxu1 }
 0x37f   :  { %v689_v49 = vadd.f32 %v688_v48, %v618_v0  ;;  %v2282_v52 = vpop.f32.mrb[13].mxu1  ;;  %v2657_v0 = vmov 1  }
 0x380   :  { %2590 = vset.pattern.permute.xlu1 %v2657_v0 }
 0x381   :  { %v693_v55 = vsel %vm692_vm4, %v689_v49, -inf }
 0x382   :  { %694 = vmax.xlane.f32.xlu0 %v693_v55  ;;  %v2658_v55 = vmov 2  }
 0x386   :  { %v866_v57 = vpop.f32.mrb[14].mxu1 }
 0x387   :  { %v867_v58 = vadd.f32 %v866_v57, %v796_v23  ;;  %v2304_v60 = vpop.f32.mrb[15].mxu1 }
 0x389   :  { %v944_v62 = vadd.f32 %v940_v26, %v867_v58 }
 0x38b   :  { %v946_v3 = vadd.f32 %v945_v61, %v944_v62 }
 0x38d   :  { %v947_v5 = vmax.f32 %v946_v3, 0.0 }
 0x38f   :  { %2325 = vmatmul.mubr.msk.f32.vlgmr.msra.gmra.mrb[16].mxu1 %vm36_vm1, %v947_v5 }
 0x390   :  { %2531 = vmatpush3.bf16.msra.mxu1 %v2528_v47  ;;  %2357 = vmatprep.mubr.msk.f32.mxu1 %vm36_vm1, %v3001_v46 }
 0x391   :  { %2533 = vmatprep.subr.bf16.mxu1 %v2532_v6 }
 0x394   :  { %2535 = vmatpush3.bf16.msra.mxu1 %v2532_v6 }
 0x395   :  { %2537 = vmatprep.subr.bf16.mxu1 %v2536_v9 }
 0x397   :  { %2358 = vmatmul.mubr.msk.f32.vlgmr.msra.gmra.mrb[18].mxu1 %vm36_vm1, %v30_v13  ;;  %v1226_v13 = vadd.f32 %v1225_v8, %v3065_v29 }
 0x398   :  { %2539 = vmatpush3.bf16.msra.mxu1 %v2536_v9  ;;  %2368 = vmatprep.mubr.msk.f32.mxu1 %vm36_vm1, %v3133_v15 }
 0x399   :  { %2541 = vmatprep.subr.bf16.mxu1 %v2540_v14 }
 0x39c   :  { %2543 = vmatpush3.bf16.msra.mxu1 %v2540_v14 }
 0x39d   :  { %2553 = vmatprep.subr.bf16.mxu1 %v2552_v18 }
 0x39f   :  { %2369 = vmatmul.mubr.msk.f32.vlgmr.msra.gmra.mrb[18].mxu1 %vm36_vm1, %v3153_v21 }
 0x3a0   :  { %2555 = vmatpush3.bf16.msra.mxu1 %v2552_v18  ;;  %2390 = vmatprep.mubr.msk.f32.mxu1 %vm36_vm1, %v2896_v12 }
 0x3a1   :  { %2557 = vmatprep.subr.bf16.mxu1 %v2556_v22 }
 0x3a4   :  { %2559 = vmatpush3.bf16.msra.mxu1 %v2556_v22 }
 0x3a7   :  { %2391 = vmatmul.mubr.msk.f32.vlgmr.msra.gmra.mrb[20].mxu1 %vm36_vm1, %v2874_v2 }
 0x40f   :  { %v695_v23 = vpop.xlane.xlu0 %694 }
 0x410   :  { %v696_v24 = vsub.f32 %v689_v49, %v695_v23  ;;  %v1480_v23 = vmul.f32 5.0, %v3069_v32 }
 0x412   :  { %v697_v25 = vmul.f32 1.442695, %v696_v24  ;;  %v1481_v24 = vmul.f32 5.0, %v3067_v31 }
 0x414   :  { %2596 = vpow2.f32 %v697_v25  ;;  %v1564_v25 = vsel %vm1563_vm6, %v1480_v23, -inf }
 0x41e   :  { %v2597_v26 = vpop.eup %2596 }
 0x41f   :  { %v699_v27 = vsel %vm692_vm4, %v2597_v26, 0.0 }
 0x420   :  { %700 = vadd.xlane.f32.xlu1 %v699_v27  ;;  %v1567_v27 = vsel %vm1563_vm6, %v1481_v24, -inf }
 0x462   :  { %v1022_v38 = vpop.f32.mrb[16].mxu1 }
 0x463   :  { %v1023_v39 = vadd.f32 %v1022_v38, %v952_v37  ;;  %v2326_v40 = vpop.f32.mrb[17].mxu1 }
 0x465   :  { %v1026_v41 = vsel %vm692_vm4, %v1023_v39, -inf }
 0x466   :  { %1027 = vmax.xlane.f32.xlu0 %v1026_v41  ;;  %v1398_v41 = vld [vmem:[%s3326_s4 + $0x48] ss:$0 sm:$0xff]  ;;  %s2659_s4 = smov 2  }
 0x472   :  { %v3166_v43 = vpop.f32.mrb[18].mxu1 }
 0x473   :  { %v3168_v44 = vpop.f32.mrb[19].mxu1 }
 0x47a   :  { %v2392_v45 = vpop.f32.mrb[20].mxu1 }
 0x47b   :  { %v1552_v47 = vpop.f32.mrb[21].mxu1 }
 0x47c   :  { %v1561_v57 = vmul.f32 5.0, %v1552_v47 }
 0x47e   :  { %v1589_v58 = vsel %vm1588_vm5, %v1561_v57, -inf }
 0x4ad   :  { %v701_v48 = vpop.xlane.xlu1 %700 }
 0x4ae   :  { %2598 = vrcp.f32 %v701_v48  ;;  %v1400_v48 = vadd.f32 %v3166_v43, %v1398_v41  ;;  %v1624_v43 = vmul.f32 %v3001_v46, %v3153_v21 }
 0x4b8   :  { %v2599_v49 = vpop.eup %2598 }
 0x4b9   :  { %v703_v52 = vmul.f32 %v2599_v49, %v2597_v26  ;;  %v1562_v26 = vmul.f32 5.0, %v2392_v45  ;;  %v1399_v49 = vadd.f32 %v1398_v41, %v3168_v44  ;;  %v1625_v44 = vmul.f32 %v2967_v36, %v2967_v36 }
 0x4bb   :  { %706 = vperm.xlu0 %2589, %v703_v52  }
 0x4bf   :  { %2595 = vset.pattern.permute.xlu0 %v2658_v55 }
 0x4da   :  { %1590 = vmax.xlane.f32.xlu0 %v1589_v58  ;;  %v1626_v58 = vmul.f32 %v2987_v42, %v2987_v42 }
 0x4f3   :  { %v1028_v60 = vpop.xlane.xlu0 %1027 }
 0x4f4   :  { %v1029_v61 = vsub.f32 %v1023_v39, %v1028_v60  ;;  %v1627_v60 = vmul.f32 %v2951_v30, %v2951_v30 }
 0x4f6   :  { %v1030_v62 = vmul.f32 1.442695, %v1029_v61  ;;  %v1628_v61 = vmul.f32 %v3133_v15, %v3133_v15 }
 0x4f8   :  { %2600 = vpow2.f32 %v1030_v62 }
 0x502   :  { %v2601_v63 = vpop.eup %2600 }
 0x503   :  { %v1032_v1 = vsel %vm692_vm4, %v2601_v63, 0.0 }
 0x504   :  { %1033 = vadd.xlane.f32.xlu1 %v1032_v1 }
 0x515   :  { %711 = vperm.xlu1 %2590, %v703_v52  }
 0x519   :  { %2591 = vset.pattern.permute.xlu1 %v2658_v55 }
 0x51a   :  { %717 = vperm.xlu1 %2591, %v703_v52  }
 0x51e   :  { %2592 = vset.pattern.permute.xlu1 %v2656_v34  ;;  %v1592_v34 = vsel %vm1588_vm5, %v1562_v26, -inf }
 0x53a   :  { %v707_v5 = vpop.permute.xlu0 %706 }
 0x53b   :  { %v709_v9 = vmul.f32 %v707_v5, %v2828_v50  ;;  %v351_v5 = vadd.f32 %v3012_v51, %v3017_v53 }
 0x53d   :  { %v2004_v8 = vmul.f32 -1.442695, %v351_v5 }
 0x567   :  { %v3182_v50 = vpop.xlane.xlu0 %1590 }
 0x568   :  { %v1595_v28 = vsub.f32 %v1561_v57, %v3182_v50 }
 0x56a   :  { %v1597_v29 = vmul.f32 1.442695, %v1595_v28 }
 0x591   :  { %v1034_v3 = vpop.xlane.xlu1 %1033 }
 0x592   :  { %2602 = vrcp.f32 %v1034_v3 }
 0x593   :  { %2604 = vpow2.f32 %v1597_v29 }
 0x595   :  { %v712_v6 = vpop.permute.xlu1 %711 }
 0x596   :  { %v714_v7 = vmul.f32 %v712_v6, %v2874_v2 }
 0x598   :  { %v715_v14 = vadd.f32 %v714_v7, %v709_v9 }
 0x599   :  { %v718_v10 = vpop.permute.xlu1 %717 }
 0x59a   :  { %v720_v16 = vmul.f32 %v718_v10, %v2896_v12 }
 0x59c   :  { %v2603_v17 = vpop.eup %2602  ;;  %v721_v18 = vadd.f32 %v720_v16, %v715_v14 }
 0x59d   :  { %v1036_v19 = vmul.f32 %v2603_v17, %v2601_v63  ;;  %v2605_v37 = vpop.eup %2604 }
 0x59e   :  { %v1617_v20 = vmul.f32 %v1226_v13, %v721_v18  ;;  %v1618_v22 = vmul.f32 %v1227_v11, %v721_v18  ;;  %v1601_v38 = vsel %vm1588_vm5, %v2605_v37, 0.0 }
 0x59f   :  { %1039 = vperm.xlu1 %2592, %v1036_v19  }
 0x5a0   :  { %2407 = vmatprep.mubr.msk.f32.mxu0 %vm36_vm1, %v1617_v20 }
 0x5a1   :  { %2408 = vmatmul.mubr.msk.f32.gmra.mrb[18].mxu0 %vm36_vm1, %v1618_v22 }
 0x5a3   :  { %2593 = vset.pattern.permute.xlu1 %v2657_v0 }
 0x5a4   :  { %1044 = vperm.xlu1 %2593, %v1036_v19  }
 0x5a8   :  { %2594 = vset.pattern.permute.xlu1 %v2658_v55  ;;  %v1621_v55 = vmul.f32 %v2951_v30, %v2967_v36  ;;  %v1629_v36 = vmul.f32 %v3153_v21, %v3153_v21 }
 0x5a9   :  { %1050 = vperm.xlu1 %2594, %v1036_v19  }
 0x5cd   :  { %1565 = vmax.xlane.f32.xlu1 %v1564_v25 }
 0x5d1   :  { %1568 = vmax.xlane.f32.xlu1 %v1567_v27 }
 0x5d5   :  { %1593 = vmax.xlane.f32.xlu1 %v1592_v34 }
 0x5d9   :  { %1602 = vadd.xlane.f32.xlu1 %v1601_v38 }
 0x61e   :  { %v1040_v39 = vpop.permute.xlu1 %1039 }
 0x61f   :  { %v1042_v31 = vmul.f32 %v1040_v39, %v2842_v54  ;;  %v1622_v54 = vmul.f32 %v2951_v30, %v2987_v42  ;;  %v1630_v42 = vmul.f32 %v3001_v46, %v3001_v46 }
 0x623   :  { %v1045_v32 = vpop.permute.xlu1 %1044 }
 0x624   :  { %v1047_v40 = vmul.f32 %v1045_v32, %v2874_v2 }
 0x626   :  { %v1048_v47 = vadd.f32 %v1047_v40, %v1042_v31 }
 0x628   :  { %v1051_v45 = vpop.permute.xlu1 %1050 }
 0x629   :  { %v1053_v0 = vmul.f32 %v1051_v45, %v2896_v12  ;;  %v1623_v12 = vmul.f32 %v3001_v46, %v3133_v15 }
 0x62b   :  { %v1054_v52 = vadd.f32 %v1053_v0, %v1048_v47 }
 0x62d   :  { %v1619_v57 = vmul.f32 %v1399_v49, %v1054_v52  ;;  %v1620_v2 = vmul.f32 %v1400_v48, %v1054_v52 }
 0x62f   :  { %2410 = vmatprep.mubr.msk.f32.mxu0 %vm36_vm1, %v1619_v57 }
 0x630   :  { %2411 = vmatmul.mubr.msk.f32.gmra.mrb[20].mxu0 %vm36_vm1, %v1620_v2 }
 0x631   :  { %2413 = vmatprep.mubr.msk.f32.mxu0 %vm36_vm1, %v1621_v55 }
 0x634   :  { %2414 = vmatmul.mubr.msk.f32.gmra.mrb[22].mxu0 %vm36_vm1, %v1622_v54 }
 0x635   :  { %2416 = vmatprep.mubr.msk.f32.mxu0 %vm36_vm1, %v1623_v12 }
 0x638   :  { %2417 = vmatmul.mubr.msk.f32.gmra.mrb[24].mxu0 %vm36_vm1, %v1624_v43 }
 0x639   :  { %2419 = vmatprep.mubr.msk.f32.mxu0 %vm36_vm1, %v1625_v44  ;;  %v2005_v44 = vmul.f32 -1.442695, %v3020_v56 }
 0x63c   :  { %2420 = vmatmul.mubr.msk.f32.gmra.mrb[26].mxu0 %vm36_vm1, %v1626_v58 }
 0x63d   :  { %2422 = vmatprep.mubr.msk.f32.mxu0 %vm36_vm1, %v1627_v60  ;;  %v2006_v60 = vmul.f32 -1.442695, %v3023_v59 }
 0x640   :  { %2423 = vmatmul.mubr.msk.f32.gmra.mrb[28].mxu0 %vm36_vm1, %v1628_v61 }
 0x641   :  { %2425 = vmatprep.mubr.msk.f32.mxu0 %vm36_vm1, %v1629_v36 }
 0x644   :  { %2426 = vmatmul.mubr.msk.f32.gmra.mrb[30].mxu0 %vm36_vm1, %v1630_v42 }
 0x65a   :  { %v3231_v30 = vpop.xlane.xlu1 %1565 }
 0x65b   :  { %v1570_v15 = vsub.f32 %v1480_v23, %v3231_v30 }
 0x65d   :  { %v1572_v62 = vmul.f32 1.442695, %v1570_v15 }
 0x65e   :  { %v3234_v63 = vpop.xlane.xlu1 %1568 }
 0x65f   :  { %2606 = vpow2.f32 %v1572_v62  ;;  %v1571_v1 = vsub.f32 %v1481_v24, %v3234_v63 }
 0x661   :  { %v1574_v21 = vmul.f32 1.442695, %v1571_v1 }
 0x662   :  { %v3237_v3 = vpop.xlane.xlu1 %1593 }
 0x663   :  { %2608 = vpow2.f32 %v1574_v21  ;;  %v1596_v46 = vsub.f32 %v1562_v26, %v3237_v3 }
 0x665   :  { %v1599_v6 = vmul.f32 1.442695, %v1596_v46 }
 0x666   :  { %v1603_v19 = vpop.xlane.xlu1 %1602 }
 0x667   :  { %2610 = vpow2.f32 %v1599_v6 }
 0x668   :  { %2612 = vpow2.f32 %v2004_v8 }
 0x669   :  { %v2607_v7 = vpop.eup %2606 }
 0x66a   :  { %v1576_v9 = vsel %vm1563_vm6, %v2607_v7, 0.0 }
 0x66b   :  { %1577 = vadd.xlane.f32.xlu0 %v1576_v9 }
 0x66d   :  { %v2609_v10 = vpop.eup %2608 }
 0x66e   :  { %v1579_v11 = vsel %vm1563_vm6, %v2609_v10, 0.0 }
 0x66f   :  { %1580 = vadd.xlane.f32.xlu0 %v1579_v11 }
 0x671   :  { %v2611_v13 = vpop.eup %2610 }
 0x672   :  { %v1604_v14 = vsel %vm1588_vm5, %v2611_v13, 0.0  ;;  %v2613_v18 = vpop.eup %2612 }
 0x673   :  { %1605 = vadd.xlane.f32.xlu1 %v1604_v14  ;;  %v373_v51 = vadd.f32 1.0, %v2613_v18 }
 0x674   :  { %v2409_v16 = vpop.f32.mrb[18].mxu0 }
 0x675   :  { %v1771_v17 = vpop.f32.mrb[19].mxu0  ;;  %2614 = vrcp.f32 %v373_v51 }
 0x676   :  { %2616 = vlog2.f32 %v1603_v19 }
 0x67f   :  { %v2615_v53 = vpop.eup %2614 }
 0x684   :  { %1897 = vrot.lane.b32.xlu1 %v3078_v4, %s2659_s4  ;;  %s2671_s4 = smov 18  }
 0x685   :  { %1891 = vrot.lane.b32.xlu0 %v3071_v33, %s2660_s16  ;;  %v2617_v33 = vpop.eup %2616  ;;  %s2672_s16 = smov 20  }
 0x686   :  { %v1608_v25 = vmul.f32 0.6931472, %v2617_v33 }
 0x688   :  { %1903 = vrot.lane.b32.xlu1 %v3076_v35, %s2661_s17  ;;  %v1611_v32 = vadd.f32 %v1608_v25, %v3182_v50 }
 0x689   :  { %1977 = vrot.lane.b32.xlu0 %v2615_v53, %s2662_s18 }
 0x68c   :  { %1923 = vrot.lane.b32.xlu1 %v2409_v16, %s2663_s19 }
 0x68d   :  { %1917 = vrot.lane.b32.xlu0 %v1771_v17, %s2664_s20 }
 0x6f8   :  { %v1578_v20 = vpop.xlane.xlu0 %1577 }
 0x6f9   :  { %2618 = vlog2.f32 %v1578_v20 }
 0x6fc   :  { %v1581_v22 = vpop.xlane.xlu0 %1580 }
 0x6fd   :  { %2620 = vlog2.f32 %v1581_v22 }
 0x700   :  { %v1606_v4 = vpop.xlane.xlu1 %1605  ;;  %v1892_v28 = vpop.permute.xlu0 %1891 }
 0x701   :  { %2622 = vlog2.f32 %v1606_v4  ;;  %1895 = vst.msk [vmem:[%s3328_s5] sm:$0xff] %vm1894_vm7, %v1892_v28 }
 0x703   :  { %v2619_v35 = vpop.eup %2618  ;;  %v2412_v29 = vpop.f32.mrb[20].mxu0 }
 0x704   :  { %v1583_v23 = vmul.f32 0.6931472, %v2619_v35  ;;  %v1898_v24 = vpop.permute.xlu1 %1897  ;;  %1935 = vrot.lane.b32.xlu1 %v2412_v29, %s2665_s23  ;;  %v1781_v26 = vpop.f32.mrb[21].mxu0 }
 0x705   :  { %1901 = vst.msk [vmem:[%s3328_s5] sm:$0xff] %vm1900_vm8, %v1898_v24  ;;  %1929 = vrot.lane.b32.xlu0 %v1781_v26, %s2666_s25  ;;  %v3264_v41 = vpop.permute.xlu0 %1977 }
 0x706   :  { %v1586_v37 = vadd.f32 %v1583_v23, %v3231_v30 }
 0x707   :  { %v2621_v27 = vpop.eup %2620  ;;  %v3254_v34 = vpop.f32.mrb[22].mxu0 }
 0x708   :  { %v1585_v38 = vmul.f32 0.6931472, %v2621_v27  ;;  %v1904_v39 = vpop.permute.xlu1 %1903  ;;  %v3261_v40 = vpop.f32.mrb[23].mxu0 }
 0x709   :  { %1907 = vst.msk [vmem:[%s3328_s5] sm:$0xff] %vm1906_vm9, %v1904_v39  ;;  %v1918_v52 = vpop.permute.xlu0 %1917 }
 0x70a   :  { %v1587_v31 = vadd.f32 %v1585_v38, %v3234_v63  ;;  %1909 = vst.msk [vmem:[%s3328_s5] sm:$0xff] %vm1908_vm10, %v1586_v37 }
 0x70b   :  { %v2623_v45 = vpop.eup %2622  ;;  %1911 = vst.msk [vmem:[%s3328_s5] sm:$0xff] %vm1910_vm11, %v1611_v32  ;;  %v3272_v50 = vpop.f32.mrb[24].mxu0 }
 0x70c   :  { %v1610_v47 = vmul.f32 0.6931472, %v2623_v45  ;;  %1913 = vst.msk [vmem:[%s3328_s5] sm:$0xff] %vm1912_vm12, %v1587_v31  ;;  %v3277_v0 = vpop.f32.mrb[25].mxu0  ;;  %v1924_v57 = vpop.permute.xlu1 %1923  ;;  %vm1932_vm12 = vcmask 89168  }
 0x70e   :  { %v1612_v48 = vadd.f32 %v1610_v47, %v3237_v3 }
 0x70f   :  { %v2421_v49 = vpop.f32.mrb[26].mxu0 }
 0x710   :  { %1915 = vst.msk [vmem:[%s3328_s5] sm:$0xff] %vm1914_vm13, %v1612_v48  ;;  %2624 = vrsqrt.f32 %v2421_v49  ;;  %v1811_v55 = vpop.f32.mrb[27].mxu0  ;;  %vm1850_vm0 = vcmp.eq.f32.partialorder %v2421_v49, inf  ;;  %vm1852_vm2 = vcmp.eq.f32.partialorder %v2421_v49, 0.0  ;;  %v1853_v62 = vand.u32 2147483648, %v2421_v49 }
 0x711   :  { %1921 = vst.msk [vmem:[%s3328_s5] sm:$0xff] %vm1920_vm14, %v1918_v52  ;;  %2626 = vrsqrt.f32 %v1811_v55  ;;  %vm1842_vm1 = vcmp.eq.f32.partialorder %v1811_v55, inf  ;;  %vm1844_vm3 = vcmp.eq.f32.partialorder %v1811_v55, 0.0  ;;  %v1845_v21 = vand.u32 2147483648, %v1811_v55 }
 0x712   :  { %1927 = vst.msk [vmem:[%s3328_s5] sm:$0xff] %vm1926_vm15, %v1924_v57  ;;  %vm1938_vm13 = vcmask 97368   ;;  %vm1947_vm14 = vcmask 105568   ;;  %vm1956_vm15 = vcmask 113768  }
 0x713   :  { %v2424_v2 = vpop.f32.mrb[28].mxu0 }
 0x714   :  { %2628 = vrsqrt.f32 %v2424_v2  ;;  %v1821_v54 = vpop.f32.mrb[29].mxu0  ;;  %vm1866_vm4 = vcmp.eq.f32.partialorder %v2424_v2, inf  ;;  %vm1868_vm5 = vcmp.eq.f32.partialorder %v2424_v2, 0.0  ;;  %v1869_v59 = vand.u32 2147483648, %v2424_v2 }
 0x715   :  { %2630 = vrsqrt.f32 %v1821_v54  ;;  %vm1858_vm6 = vcmp.eq.f32.partialorder %v1821_v54, inf  ;;  %v1861_v7 = vand.u32 2147483648, %v1821_v54  ;;  %vm1860_vm7 = vcmp.eq.f32.partialorder %v1821_v54, 0.0 }
 0x717   :  { %v2427_v12 = vpop.f32.mrb[30].mxu0 }
 0x718   :  { %2632 = vrsqrt.f32 %v2427_v12  ;;  %v1831_v43 = vpop.f32.mrb[31].mxu0  ;;  %vm1882_vm8 = vcmp.eq.f32.partialorder %v2427_v12, inf  ;;  %vm1884_vm9 = vcmp.eq.f32.partialorder %v2427_v12, 0.0  ;;  %v1885_v16 = vand.u32 2147483648, %v2427_v12 }
 0x719   :  { %2634 = vrsqrt.f32 %v1831_v43  ;;  %vm1874_vm10 = vcmp.eq.f32.partialorder %v1831_v43, inf  ;;  %vm1876_vm11 = vcmp.eq.f32.partialorder %v1831_v43, 0.0  ;;  %v1877_v20 = vand.u32 2147483648, %v1831_v43 }
 0x71a   :  { %v2625_v58 = vpop.eup %2624  ;;  %2636 = vpow2.f32 %v2005_v44 }
 0x71b   :  { %v2627_v61 = vpop.eup %2626  ;;  %v1849_v36 = vmul.f32 %v2625_v58, %v2421_v49  ;;  %2638 = vpow2.f32 %v2006_v60 }
 0x71c   :  { %v1841_v42 = vmul.f32 %v2627_v61, %v1811_v55 }
 0x71d   :  { %v1851_v30 = vsel %vm1850_vm0, %v2421_v49, %v1849_v36  ;;  %vm1965_vm0 = vcmask 121968  }
 0x71e   :  { %v2629_v15 = vpop.eup %2628  ;;  %v1843_v63 = vsel %vm1842_vm1, %v1811_v55, %v1841_v42  ;;  %v1854_v3 = vsel %vm1852_vm2, %v1853_v62, %v1851_v30  ;;  %vm1974_vm1 = vcmask 130168   ;;  %vm1980_vm2 = vcmask 146560  }
 0x71f   :  { %v2631_v1 = vpop.eup %2630  ;;  %v1865_v56 = vmul.f32 %v2629_v15, %v2424_v2  ;;  %v1846_v5 = vsel %vm1844_vm3, %v1845_v21, %v1843_v63  ;;  %v1855_v11 = vmax.f32 %v1854_v3, 1e-08  ;;  %vm1986_vm3 = vcmask 162960  }
 0x720   :  { %v1857_v46 = vmul.f32 %v2631_v1, %v1821_v54  ;;  %v1847_v17 = vmax.f32 %v1846_v5, 1e-08 }
 0x721   :  { %v1867_v6 = vsel %vm1866_vm4, %v2424_v2, %v1865_v56  ;;  %vm1992_vm4 = vcmask 179360  }
 0x722   :  { %v2633_v8 = vpop.eup %2632  ;;  %v1859_v9 = vsel %vm1858_vm6, %v1821_v54, %v1857_v46  ;;  %v1870_v18 = vsel %vm1868_vm5, %v1869_v59, %v1867_v6 }
 0x723   :  { %v2635_v10 = vpop.eup %2634  ;;  %v1862_v13 = vsel %vm1860_vm7, %v1861_v7, %v1859_v9  ;;  %v1881_v14 = vmul.f32 %v2633_v8, %v2427_v12  ;;  %v1871_v29 = vmax.f32 %v1870_v18, 1e-08 }
 0x724   :  { %v1863_v51 = vmax.f32 %v1862_v13, 1e-08  ;;  %v1873_v53 = vmul.f32 %v2635_v10, %v1831_v43  ;;  %v2637_v35 = vpop.eup %2636 }
 0x725   :  { %v1883_v19 = vsel %vm1882_vm8, %v2427_v12, %v1881_v14  ;;  %v2639_v25 = vpop.eup %2638  ;;  %v374_v38 = vadd.f32 1.0, %v2637_v35 }
 0x726   :  { %v1886_v22 = vsel %vm1884_vm9, %v1885_v16, %v1883_v19  ;;  %v1875_v4 = vsel %vm1874_vm10, %v1831_v43, %v1873_v53  ;;  %v1949_v28 = vmul.f32 %v1863_v51, %v1855_v11  ;;  %v1940_v33 = vmul.f32 %v1863_v51, %v1847_v17 }
 0x727   :  { %v1887_v23 = vmax.f32 %v1886_v22, 1e-08  ;;  %v1878_v24 = vsel %vm1876_vm11, %v1877_v20, %v1875_v4  ;;  %v375_v39 = vadd.f32 1.0, %v2639_v25 }
 0x728   :  { %v1879_v26 = vmax.f32 %v1878_v24, 1e-08  ;;  %2640 = vrcp.f32 %v1949_v28 }
 0x729   :  { %2642 = vrcp.f32 %v1940_v33  ;;  %v1958_v27 = vmul.f32 %v1887_v23, %v1871_v29 }
 0x72a   :  { %v1967_v37 = vmul.f32 %v1887_v23, %v1879_v26 }
 0x72b   :  { %2644 = vrcp.f32 %v1958_v27 }
 0x72c   :  { %2646 = vrcp.f32 %v1967_v37 }
 0x72d   :  { %2648 = vrcp.f32 %v374_v38 }
 0x72e   :  { %2650 = vrcp.f32 %v375_v39 }
 0x732   :  { %v2641_v32 = vpop.eup %2640 }
 0x733   :  { %v2643_v31 = vpop.eup %2642  ;;  %v1951_v45 = vmul.f32 %v2641_v32, %v3254_v34 }
 0x734   :  { %v1942_v47 = vmul.f32 %v2643_v31, %v3261_v40 }
 0x735   :  { %v2645_v48 = vpop.eup %2644  ;;  %1953 = vrot.lane.b32.xlu1 %v1951_v45, %s2667_s12 }
 0x736   :  { %v2647_v49 = vpop.eup %2646  ;;  %1944 = vrot.lane.b32.xlu0 %v1942_v47, %s2668_s13  ;;  %v1960_v52 = vmul.f32 %v2645_v48, %v3277_v0 }
 0x737   :  { %v1969_v55 = vmul.f32 %v2647_v49, %v3272_v50  ;;  %v2649_v57 = vpop.eup %2648 }
 0x738   :  { %v2651_v2 = vpop.eup %2650 }
 0x739   :  { %1971 = vrot.lane.b32.xlu1 %v1969_v55, %s2669_s14 }
 0x73a   :  { %1962 = vrot.lane.b32.xlu0 %v1960_v52, %s2670_s15 }
 0x73d   :  { %1983 = vrot.lane.b32.xlu1 %v2649_v57, %s2671_s4 }
 0x73e   :  { %1989 = vrot.lane.b32.xlu0 %v2651_v2, %s2672_s16 }
 0x776   :  { %v1936_v40 = vpop.permute.xlu1 %1935 }
 0x777   :  { %v1930_v34 = vpop.permute.xlu0 %1929 }
 0x778   :  { %1933 = vst.msk [vmem:[%s3328_s5] sm:$0xff] %vm1932_vm12, %v1930_v34 }
 0x779   :  { %1939 = vst.msk [vmem:[%s3328_s5] sm:$0xff] %vm1938_vm13, %v1936_v40 }
 0x7a7   :  { %v1954_v50 = vpop.permute.xlu1 %1953 }
 0x7a8   :  { %v1945_v0 = vpop.permute.xlu0 %1944 }
 0x7a9   :  { %1948 = vst.msk [vmem:[%s3328_s5] sm:$0xff] %vm1947_vm14, %v1945_v0 }
 0x7aa   :  { %1957 = vst.msk [vmem:[%s3328_s5] sm:$0xff] %vm1956_vm15, %v1954_v50 }
 0x7ab   :  { %v1972_v54 = vpop.permute.xlu1 %1971 }
 0x7ac   :  { %v1963_v12 = vpop.permute.xlu0 %1962 }
 0x7ad   :  { %1966 = vst.msk [vmem:[%s3328_s5] sm:$0xff] %vm1965_vm0, %v1963_v12 }
 0x7ae   :  { %1975 = vst.msk [vmem:[%s3328_s5] sm:$0xff] %vm1974_vm1, %v1972_v54 }
 0x7af   :  { %1981 = vst.msk [vmem:[%s3328_s5] sm:$0xff] %vm1980_vm2, %v3264_v41  ;;  %v1984_v43 = vpop.permute.xlu1 %1983 }
 0x7b0   :  { %v1990_v44 = vpop.permute.xlu0 %1989  ;;  %1987 = vst.msk [vmem:[%s3328_s5] sm:$0xff] %vm1986_vm3, %v1984_v43 }
 0x7b1   :  { %1993 = vst.msk [vmem:[%s3328_s5] sm:$0xff] %vm1992_vm4, %v1990_v44 }

</bundles_post_ra>
